<compile_context>
chip_gen: v6e
topology: v6e:2x2x1
jax: 0.10.0
libtpu: 0.0.40
codegen_flags: <defaults>
</compile_context>

<pallas_src>
import functools
import math

import numpy as np
import jax
import jax.numpy as jnp
from jax.experimental import pallas as pl
from jax.experimental.pallas import tpu as pltpu

# ---------------- synthetic BERT config (small) ----------------
VOCAB = 30
HIDDEN = 32
N_HEADS = 2
HEAD_DIM = HIDDEN // N_HEADS
INTERMEDIATE = 64
INTER_PAD = 128            # FFN intermediate zero-padded to a lane-dense width
N_LAYERS = 2
MAX_POS = 16
TYPE_VOCAB = 2
LN_EPS = 1e-12

QKV_W = 3 * HIDDEN         # 96 real fused-QKV output columns
QKV_PAD = 128              # zero-padded to a lane-dense width

# rows in the packed [NV, 128] bias / LayerNorm slab
VEC_GLOBAL_ROWS = 2                        # emb LN gamma, emb LN beta
VEC_ROWS_PER_LAYER = 8                     # bqkv, bo, ln1g, ln1b, b1, b2, ln2g, ln2b
NV = VEC_GLOBAL_ROWS + N_LAYERS * VEC_ROWS_PER_LAYER

PAD_ID, CLS_ID, SEP_ID = 0, 1, 2
NU_ID, NUM_SUFFIX_ID = 5, 6  # stand-ins for the 'nu' and '##m' wordpieces


# ---------------- in-kernel math helpers (all f32 vector math) ----------------
def _layer_norm(x, g, b):
    mu = jnp.mean(x, axis=-1, keepdims=True)
    var = jnp.mean(jnp.square(x - mu), axis=-1, keepdims=True)
    return (x - mu) * jax.lax.rsqrt(var + LN_EPS) * g + b


def _gelu(x):
    # TODO(synk): BERT uses exact erf-GELU; tanh approximation used here (Mosaic-safe transcendental).
    return 0.5 * x * (1.0 + jnp.tanh(0.7978845608028654 * (x + 0.044715 * x * x * x)))


# ---------------- fused encoder kernel ----------------
def _encoder_kernel(
    x_ref,      # [M, H]            embeddings (pre-LN), f32
    bias_ref,   # [B, 1, S]         additive attention mask, f32
    vecs_ref,   # [NV, 128]         all bias / LN rows, f32
    w_in_ref,   # [L, 2, H, 128]    bf16: [l,0]=fused/scaled QKV, [l,1]=padded w1
    w_out_ref,  # [L, H+INTER_PAD, H] bf16: rows 0:H = wo, rows H: = padded w2
    o_ref,      # [M, H]            f32
    *, B, S,
):
    M = B * S
    bias = bias_ref[...]                                            # [B, 1, S]

    # Embedding LayerNorm (plain LN path, no dummy residual).
    x = _layer_norm(x_ref[...], vecs_ref[0:1, :HIDDEN], vecs_ref[1:2, :HIDDEN])

    # Layers statically unrolled; everything stays in vregs / VMEM.
    for l in range(N_LAYERS):
        r = VEC_GLOBAL_ROWS + l * VEC_ROWS_PER_LAYER
        bqkv = vecs_ref[r + 0:r + 1, :]                             # [1, 128]
        bo   = vecs_ref[r + 1:r + 2, :HIDDEN]
        ln1g = vecs_ref[r + 2:r + 3, :HIDDEN]
        ln1b = vecs_ref[r + 3:r + 4, :HIDDEN]
        b1   = vecs_ref[r + 4:r + 5, :]                             # [1, 128] (padded)
        b2   = vecs_ref[r + 5:r + 6, :HIDDEN]
        ln2g = vecs_ref[r + 6:r + 7, :HIDDEN]
        ln2b = vecs_ref[r + 7:r + 8, :HIDDEN]

        w_out_l = w_out_ref[l]                                      # [H+INTER_PAD, H] bf16

        # ---- fused QKV projection: one lane-dense [M,128] matmul, no scratch ----
        # (1/sqrt(head_dim) is already folded into the Q columns at pack time.)
        qkv = jnp.dot(x.astype(jnp.bfloat16), w_in_ref[l, 0],
                      preferred_element_type=jnp.float32) + bqkv    # [M, 128] f32

        # ---- attention: batched over B per einsum, heads statically unrolled ----
        ctx_heads = []
        for h in range(N_HEADS):
            q = qkv[:, h * HEAD_DIM:(h + 1) * HEAD_DIM].reshape(B, S, HEAD_DIM)
            k = qkv[:, HIDDEN + h * HEAD_DIM:
                       HIDDEN + (h + 1) * HEAD_DIM].reshape(B, S, HEAD_DIM)
            v = qkv[:, 2 * HIDDEN + h * HEAD_DIM:
                       2 * HIDDEN + (h + 1) * HEAD_DIM].reshape(B, S, HEAD_DIM)

            s = jnp.einsum("bqd,bkd->bqk", q, k,
                           preferred_element_type=jnp.float32) + bias
            s = s - jnp.max(s, axis=-1, keepdims=True)
            p = jnp.exp(s)
            # exact divide (denominator >= 1 after max-subtraction)
            p = p / jnp.sum(p, axis=-1, keepdims=True)
            ctx = jnp.einsum("bqk,bkd->bqd", p, v,
                             preferred_element_type=jnp.float32)
            ctx_heads.append(ctx.reshape(M, HEAD_DIM))

        # ---- merge heads, single output projection against the unsplit wo ----
        ctx_all = jnp.concatenate(ctx_heads, axis=-1)               # [M, H]
        attn = jnp.dot(ctx_all.astype(jnp.bfloat16), w_out_l[:HIDDEN, :],
                       preferred_element_type=jnp.float32) + bo
        x = _layer_norm(attn + x, ln1g, ln1b)

        # ---- feed-forward (lane-dense 128-wide intermediate) ----
        hdn = jnp.dot(x.astype(jnp.bfloat16), w_in_ref[l, 1],
                      preferred_element_type=jnp.float32) + b1      # [M, 128]
        hdn = _gelu(hdn)
        ffn = jnp.dot(hdn.astype(jnp.bfloat16), w_out_l[HIDDEN:, :],
                      preferred_element_type=jnp.float32) + b2
        x = _layer_norm(ffn + x, ln2g, ln2b)

    o_ref[...] = x


def run_encoder(x, attn_bias, vecs, w_in, w_out, B, S):
    M = B * S
    inputs = [x, attn_bias, vecs, w_in, w_out]

    def full_spec(a):
        nd = a.ndim
        return pl.BlockSpec(a.shape, lambda i: (0,) * nd)

    return pl.pallas_call(
        functools.partial(_encoder_kernel, B=B, S=S),
        out_shape=jax.ShapeDtypeStruct((M, HIDDEN), jnp.float32),
        grid=(1,),
        in_specs=[full_spec(a) for a in inputs],
        out_specs=pl.BlockSpec((M, HIDDEN), lambda i: (0, 0)),
        compiler_params=pltpu.CompilerParams(
            dimension_semantics=("arbitrary",),
        ),
    )(*inputs)


# ---------------- parameter init (deterministic, synthetic) ----------------
def init_params(key):
    def norm(k, shape, scale=0.02):
        return scale * jax.random.normal(k, shape, jnp.float32)

    keys = iter(jax.random.split(key, 8 + 16 * N_LAYERS))
    params = {
        "word_emb": norm(next(keys), (VOCAB, HIDDEN)),
        "pos_emb": norm(next(keys), (MAX_POS, HIDDEN)),
        "type_emb": norm(next(keys), (TYPE_VOCAB, HIDDEN)),
        "emb_ln_g": jnp.ones((HIDDEN,), jnp.float32),
        "emb_ln_b": jnp.zeros((HIDDEN,), jnp.float32),
        "layers": [],
    }
    for _ in range(N_LAYERS):
        layer = {
            "wq": norm(next(keys), (HIDDEN, HIDDEN)),
            "bq": jnp.zeros((HIDDEN,), jnp.float32),
            "wk": norm(next(keys), (HIDDEN, HIDDEN)),
            "bk": jnp.zeros((HIDDEN,), jnp.float32),
            "wv": norm(next(keys), (HIDDEN, HIDDEN)),
            "bv": jnp.zeros((HIDDEN,), jnp.float32),
            "wo": norm(next(keys), (HIDDEN, HIDDEN)),
            "bo": jnp.zeros((HIDDEN,), jnp.float32),
            "ln1_g": jnp.ones((HIDDEN,), jnp.float32),
            "ln1_b": jnp.zeros((HIDDEN,), jnp.float32),
            "w1": norm(next(keys), (HIDDEN, INTERMEDIATE)),
            "b1": jnp.zeros((INTERMEDIATE,), jnp.float32),
            "w2": norm(next(keys), (INTERMEDIATE, HIDDEN)),
            "b2": jnp.zeros((HIDDEN,), jnp.float32),
            "ln2_g": jnp.ones((HIDDEN,), jnp.float32),
            "ln2_b": jnp.zeros((HIDDEN,), jnp.float32),
        }
        params["layers"].append(layer)
    return params


def _pad_row(v, width=128):
    return jnp.pad(v, (0, width - v.shape[0]))


def pack_params(params):
    """Fuse / pad / scale weights ONCE (outside the jitted forward)."""
    scale = 1.0 / math.sqrt(HEAD_DIM)
    vec_rows = [_pad_row(params["emb_ln_g"]), _pad_row(params["emb_ln_b"])]
    w_in_layers, w_out_layers = [], []
    for lyr in params["layers"]:
        # fold 1/sqrt(dH) into the query projection; pad fused QKV to 128 lanes
        wqkv = jnp.concatenate([lyr["wq"] * scale, lyr["wk"], lyr["wv"]], axis=1)   # [H, 96]
        wqkv = jnp.pad(wqkv, ((0, 0), (0, QKV_PAD - QKV_W)))                        # [H, 128]
        w1p = jnp.pad(lyr["w1"], ((0, 0), (0, INTER_PAD - INTERMEDIATE)))           # [H, 128]
        w_in_layers.append(jnp.stack([wqkv, w1p], axis=0))                          # [2, H, 128]

        w2p = jnp.pad(lyr["w2"], ((0, INTER_PAD - INTERMEDIATE), (0, 0)))           # [128, H]
        w_out_layers.append(jnp.concatenate([lyr["wo"], w2p], axis=0))              # [160, H]

        bqkv = jnp.concatenate([lyr["bq"] * scale, lyr["bk"], lyr["bv"]])           # [96]
        vec_rows += [
            _pad_row(bqkv),
            _pad_row(lyr["bo"]),
            _pad_row(lyr["ln1_g"]),
            _pad_row(lyr["ln1_b"]),
            _pad_row(lyr["b1"]),
            _pad_row(lyr["b2"]),
            _pad_row(lyr["ln2_g"]),
            _pad_row(lyr["ln2_b"]),
        ]
    packed = {
        "word_emb": params["word_emb"],
        "pos_emb": params["pos_emb"],
        "type_emb": params["type_emb"],
        "vecs": jnp.stack(vec_rows, axis=0).astype(jnp.float32),      # [NV, 128]
        "w_in": jnp.stack(w_in_layers, 0).astype(jnp.bfloat16),       # [L, 2, H, 128]
        "w_out": jnp.stack(w_out_layers, 0).astype(jnp.bfloat16),     # [L, H+INTER_PAD, H]
    }
    assert packed["vecs"].shape == (NV, 128)
    return packed


# ---------------- forward (BERT last_hidden_state) ----------------
def bert_forward(packed, token_ids, attn_mask):
    B, S = token_ids.shape
    # TODO(synk): embedding gather kept in the wrapper (jnp.take); an in-kernel
    # gather of a 30x32 table is not worth a manual DMA gather at this scale.
    emb = (
        jnp.take(packed["word_emb"], token_ids, axis=0)
        + packed["pos_emb"][:S][None, :, :]
        + packed["type_emb"][0][None, None, :]
    ).astype(jnp.float32)
    x = emb.reshape(B * S, HIDDEN)

    # additive mask precomputed once (not per head / per layer)
    attn_bias = ((1.0 - attn_mask.astype(jnp.float32)) * -1e9).reshape(B, 1, S)

    out = run_encoder(x, attn_bias, packed["vecs"], packed["w_in"],
                      packed["w_out"], B, S)
    return out.reshape(B, S, HIDDEN)


# ---------------- driver ----------------
if __name__ == "__main__":
    key = jax.random.PRNGKey(0)
    pkey, dkey = jax.random.split(key)
    params = init_params(pkey)
    packed = pack_params(params)   # packed once, outside jit

    # Synthetic "bertify_input": deterministic token ids with [CLS]/[SEP]/[PAD].
    # TODO(synk): real BertTokenizer string tokenization has no kernel equivalent.
    B, S = 2, 8
    input_lengths = [8, 6]
    rand_ids = np.asarray(jax.random.randint(dkey, (B, S), 3, VOCAB))
    tok = np.full((B, S), PAD_ID, dtype=np.int32)
    for b, L in enumerate(input_lengths):
        tok[b, 0] = CLS_ID
        tok[b, 1:L - 1] = rand_ids[b, 1:L - 1]
        tok[b, L - 1] = SEP_ID
    # plant a 'nu' '##m' pair in sentence 0 (mirrors the num_pos scan)
    tok[0, 2] = NU_ID
    tok[0, 3] = NUM_SUFFIX_ID
    token_ids = jnp.asarray(tok)
    attn_masks = (token_ids != PAD_ID).astype(jnp.int32)

    cont_reps = jax.jit(bert_forward)(packed, token_ids, attn_masks)
    jax.block_until_ready(cont_reps)

    # num_pos scan on token ids (emulates the 'nu' + '##m' string check)
    num_pos_list = []
    for row in np.asarray(token_ids):
        num_pos_list.append(
            [idx for idx in range(S - 1)
             if row[idx] == NU_ID and row[idx + 1] == NUM_SUFFIX_ID]
        )

    assert cont_reps.shape == (B, S, HIDDEN)
    assert bool(jnp.all(jnp.isfinite(cont_reps)))
    assert len(input_lengths) == B and len(num_pos_list) == B
    print("KERNEL_OK")
</pallas_src>

<mosaic_0001>
module attributes {stable_mosaic.version = 11 : i64} {
  func.func @_encoder_kernel(%arg0: i32, %arg1: memref<16x32xf32, #tpu.memory_space<vmem>>, %arg2: memref<2x1x8xf32, #tpu.memory_space<vmem>>, %arg3: memref<18x128xf32, #tpu.memory_space<vmem>>, %arg4: memref<2x2x32x128xbf16, #tpu.memory_space<vmem>>, %arg5: memref<2x160x32xbf16, #tpu.memory_space<vmem>>, %arg6: memref<16x32xf32, #tpu.memory_space<vmem>>) attributes {dimension_semantics = [#tpu.dimension_semantics<arbitrary>], iteration_bounds = array<i64: 1>, scalar_prefetch = 0 : i64, scratch_operands = 0 : i64, tpu.core_type = #tpu.core_type<tc>, window_params = [{pipeline_mode = #tpu.pipeline_mode<synchronous>, transform_indices = @transform_0, window_bounds = array<i64: 16, 32>}, {pipeline_mode = #tpu.pipeline_mode<synchronous>, transform_indices = @transform_1, window_bounds = array<i64: 2, 1, 8>}, {pipeline_mode = #tpu.pipeline_mode<synchronous>, transform_indices = @transform_2, window_bounds = array<i64: 18, 128>}, {pipeline_mode = #tpu.pipeline_mode<synchronous>, transform_indices = @transform_3, window_bounds = array<i64: 2, 2, 32, 128>}, {pipeline_mode = #tpu.pipeline_mode<synchronous>, transform_indices = @transform_4, window_bounds = array<i64: 2, 160, 32>}, {pipeline_mode = #tpu.pipeline_mode<synchronous>, transform_indices = @transform_5, window_bounds = array<i64: 16, 32>}]} {
    %c0 = arith.constant 0 : index
    %c0_0 = arith.constant 0 : index
    %c0_1 = arith.constant 0 : index
    %0 = vector.load %arg2[%c0, %c0_0, %c0_1] : memref<2x1x8xf32, #tpu.memory_space<vmem>>, vector<2x1x8xf32>
    %c0_2 = arith.constant 0 : index
    %c0_3 = arith.constant 0 : index
    %1 = vector.load %arg1[%c0_2, %c0_3] : memref<16x32xf32, #tpu.memory_space<vmem>>, vector<16x32xf32>
    %c0_4 = arith.constant 0 : index
    %c0_5 = arith.constant 0 : index
    %2 = vector.load %arg3[%c0_4, %c0_5] : memref<18x128xf32, #tpu.memory_space<vmem>>, vector<1x32xf32>
    %c1 = arith.constant 1 : index
    %c0_6 = arith.constant 0 : index
    %3 = vector.load %arg3[%c1, %c0_6] : memref<18x128xf32, #tpu.memory_space<vmem>>, vector<1x32xf32>
    %cst = arith.constant dense<0.000000e+00> : vector<16xf32>
    %4 = vector.multi_reduction <add>, %1, %cst [1] : vector<16x32xf32> to vector<16xf32>
    %5 = vector.shape_cast %4 : vector<16xf32> to vector<16x1xf32>
    %cst_7 = arith.constant 3.200000e+01 : f32
    %6 = vector.broadcast %cst_7 : f32 to vector<16x1xf32>
    %7 = arith.divf %5, %6 : vector<16x1xf32>
    %8 = vector.broadcast %7 : vector<16x1xf32> to vector<16x32xf32>
    %9 = arith.subf %1, %8 : vector<16x32xf32>
    %10 = arith.mulf %9, %9 : vector<16x32xf32>
    %cst_8 = arith.constant dense<0.000000e+00> : vector<16xf32>
    %11 = vector.multi_reduction <add>, %10, %cst_8 [1] : vector<16x32xf32> to vector<16xf32>
    %12 = vector.shape_cast %11 : vector<16xf32> to vector<16x1xf32>
    %cst_9 = arith.constant 3.200000e+01 : f32
    %13 = vector.broadcast %cst_9 : f32 to vector<16x1xf32>
    %14 = arith.divf %12, %13 : vector<16x1xf32>
    %15 = vector.broadcast %7 : vector<16x1xf32> to vector<16x32xf32>
    %16 = arith.subf %1, %15 : vector<16x32xf32>
    %cst_10 = arith.constant 9.99999996E-13 : f32
    %17 = vector.broadcast %cst_10 : f32 to vector<16x1xf32>
    %18 = arith.addf %14, %17 : vector<16x1xf32>
    %19 = math.rsqrt %18 : vector<16x1xf32>
    %20 = vector.broadcast %19 : vector<16x1xf32> to vector<16x32xf32>
    %21 = arith.mulf %16, %20 : vector<16x32xf32>
    %22 = vector.broadcast %2 : vector<1x32xf32> to vector<16x32xf32>
    %23 = arith.mulf %21, %22 : vector<16x32xf32>
    %24 = vector.broadcast %3 : vector<1x32xf32> to vector<16x32xf32>
    %25 = arith.addf %23, %24 : vector<16x32xf32>
    %c2 = arith.constant 2 : index
    %c0_11 = arith.constant 0 : index
    %26 = vector.load %arg3[%c2, %c0_11] : memref<18x128xf32, #tpu.memory_space<vmem>>, vector<1x128xf32>
    %c3 = arith.constant 3 : index
    %c0_12 = arith.constant 0 : index
    %27 = vector.load %arg3[%c3, %c0_12] : memref<18x128xf32, #tpu.memory_space<vmem>>, vector<1x32xf32>
    %c4 = arith.constant 4 : index
    %c0_13 = arith.constant 0 : index
    %28 = vector.load %arg3[%c4, %c0_13] : memref<18x128xf32, #tpu.memory_space<vmem>>, vector<1x32xf32>
    %c5 = arith.constant 5 : index
    %c0_14 = arith.constant 0 : index
    %29 = vector.load %arg3[%c5, %c0_14] : memref<18x128xf32, #tpu.memory_space<vmem>>, vector<1x32xf32>
    %c6 = arith.constant 6 : index
    %c0_15 = arith.constant 0 : index
    %30 = vector.load %arg3[%c6, %c0_15] : memref<18x128xf32, #tpu.memory_space<vmem>>, vector<1x128xf32>
    %c7 = arith.constant 7 : index
    %c0_16 = arith.constant 0 : index
    %31 = vector.load %arg3[%c7, %c0_16] : memref<18x128xf32, #tpu.memory_space<vmem>>, vector<1x32xf32>
    %c8 = arith.constant 8 : index
    %c0_17 = arith.constant 0 : index
    %32 = vector.load %arg3[%c8, %c0_17] : memref<18x128xf32, #tpu.memory_space<vmem>>, vector<1x32xf32>
    %c9 = arith.constant 9 : index
    %c0_18 = arith.constant 0 : index
    %33 = vector.load %arg3[%c9, %c0_18] : memref<18x128xf32, #tpu.memory_space<vmem>>, vector<1x32xf32>
    %c0_19 = arith.constant 0 : index
    %c0_20 = arith.constant 0 : index
    %c0_21 = arith.constant 0 : index
    %34 = vector.load %arg5[%c0_19, %c0_20, %c0_21] : memref<2x160x32xbf16, #tpu.memory_space<vmem>>, vector<1x160x32xbf16>
    %35 = vector.shape_cast %34 : vector<1x160x32xbf16> to vector<160x32xbf16>
    %36 = arith.truncf %25 : vector<16x32xf32> to vector<16x32xbf16>
    %c0_22 = arith.constant 0 : index
    %c0_23 = arith.constant 0 : index
    %c0_24 = arith.constant 0 : index
    %c0_25 = arith.constant 0 : index
    %37 = vector.load %arg4[%c0_22, %c0_23, %c0_24, %c0_25] : memref<2x2x32x128xbf16, #tpu.memory_space<vmem>>, vector<1x1x32x128xbf16>
    %38 = vector.shape_cast %37 : vector<1x1x32x128xbf16> to vector<32x128xbf16>
    %cst_26 = arith.constant dense<0.000000e+00> : vector<16x128xf32>
    %39 = tpu.matmul %36, %38, %cst_26 {dimension_numbers = #tpu.dot_dimension_numbers<[1], [0], [0], [1], [0, 0, 1, 1], [], []>} : vector<16x32xbf16>, vector<32x128xbf16>, vector<16x128xf32> -> vector<16x128xf32>
    %40 = vector.broadcast %26 : vector<1x128xf32> to vector<16x128xf32>
    %41 = arith.addf %39, %40 : vector<16x128xf32>
    %42 = vector.extract_strided_slice %41 {offsets = [0, 0], sizes = [16, 16], strides = [1, 1]} : vector<16x128xf32> to vector<16x16xf32>
    %43 = vector.shape_cast %42 : vector<16x16xf32> to vector<2x8x16xf32>
    %44 = vector.extract_strided_slice %41 {offsets = [0, 32], sizes = [16, 16], strides = [1, 1]} : vector<16x128xf32> to vector<16x16xf32>
    %45 = vector.shape_cast %44 : vector<16x16xf32> to vector<2x8x16xf32>
    %46 = vector.extract_strided_slice %41 {offsets = [0, 64], sizes = [16, 16], strides = [1, 1]} : vector<16x128xf32> to vector<16x16xf32>
    %47 = vector.shape_cast %46 : vector<16x16xf32> to vector<2x8x16xf32>
    "tpu.trace_start"() <{level = 10 : i32, message = "bqd,bkd->bqk"}> : () -> ()
    %cst_27 = arith.constant dense<0.000000e+00> : vector<2x8x8xf32>
    %48 = tpu.matmul %43, %45, %cst_27 {dimension_numbers = #tpu.dot_dimension_numbers<[2], [2], [1], [1], [0, 0, 0, 1, 1, 1], [0], [0]>} : vector<2x8x16xf32>, vector<2x8x16xf32>, vector<2x8x8xf32> -> vector<2x8x8xf32>
    "tpu.trace_stop"() : () -> ()
    %49 = vector.broadcast %0 : vector<2x1x8xf32> to vector<2x8x8xf32>
    %50 = arith.addf %48, %49 : vector<2x8x8xf32>
    %cst_28 = arith.constant dense<0xFF800000> : vector<2x8xf32>
    %51 = vector.multi_reduction <maximumf>, %50, %cst_28 [2] : vector<2x8x8xf32> to vector<2x8xf32>
    %52 = vector.shape_cast %51 : vector<2x8xf32> to vector<2x8x1xf32>
    %53 = vector.broadcast %52 : vector<2x8x1xf32> to vector<2x8x8xf32>
    %54 = arith.subf %50, %53 : vector<2x8x8xf32>
    %55 = math.exp %54 : vector<2x8x8xf32>
    %cst_29 = arith.constant dense<0.000000e+00> : vector<2x8xf32>
    %56 = vector.multi_reduction <add>, %55, %cst_29 [2] : vector<2x8x8xf32> to vector<2x8xf32>
    %57 = vector.shape_cast %56 : vector<2x8xf32> to vector<2x8x1xf32>
    %58 = vector.broadcast %57 : vector<2x8x1xf32> to vector<2x8x8xf32>
    %59 = arith.divf %55, %58 : vector<2x8x8xf32>
    "tpu.trace_start"() <{level = 10 : i32, message = "bqk,bkd->bqd"}> : () -> ()
    %cst_30 = arith.constant dense<0.000000e+00> : vector<2x8x16xf32>
    %60 = tpu.matmul %59, %47, %cst_30 {dimension_numbers = #tpu.dot_dimension_numbers<[2], [1], [1], [2], [0, 0, 0, 1, 1, 2], [0], [0]>} : vector<2x8x8xf32>, vector<2x8x16xf32>, vector<2x8x16xf32> -> vector<2x8x16xf32>
    "tpu.trace_stop"() : () -> ()
    %61 = vector.shape_cast %60 : vector<2x8x16xf32> to vector<16x16xf32>
    %62 = vector.extract_strided_slice %41 {offsets = [0, 16], sizes = [16, 16], strides = [1, 1]} : vector<16x128xf32> to vector<16x16xf32>
    %63 = vector.shape_cast %62 : vector<16x16xf32> to vector<2x8x16xf32>
    %64 = vector.extract_strided_slice %41 {offsets = [0, 48], sizes = [16, 16], strides = [1, 1]} : vector<16x128xf32> to vector<16x16xf32>
    %65 = vector.shape_cast %64 : vector<16x16xf32> to vector<2x8x16xf32>
    %66 = vector.extract_strided_slice %41 {offsets = [0, 80], sizes = [16, 16], strides = [1, 1]} : vector<16x128xf32> to vector<16x16xf32>
    %67 = vector.shape_cast %66 : vector<16x16xf32> to vector<2x8x16xf32>
    "tpu.trace_start"() <{level = 10 : i32, message = "bqd,bkd->bqk"}> : () -> ()
    %cst_31 = arith.constant dense<0.000000e+00> : vector<2x8x8xf32>
    %68 = tpu.matmul %63, %65, %cst_31 {dimension_numbers = #tpu.dot_dimension_numbers<[2], [2], [1], [1], [0, 0, 0, 1, 1, 1], [0], [0]>} : vector<2x8x16xf32>, vector<2x8x16xf32>, vector<2x8x8xf32> -> vector<2x8x8xf32>
    "tpu.trace_stop"() : () -> ()
    %69 = vector.broadcast %0 : vector<2x1x8xf32> to vector<2x8x8xf32>
    %70 = arith.addf %68, %69 : vector<2x8x8xf32>
    %cst_32 = arith.constant dense<0xFF800000> : vector<2x8xf32>
    %71 = vector.multi_reduction <maximumf>, %70, %cst_32 [2] : vector<2x8x8xf32> to vector<2x8xf32>
    %72 = vector.shape_cast %71 : vector<2x8xf32> to vector<2x8x1xf32>
    %73 = vector.broadcast %72 : vector<2x8x1xf32> to vector<2x8x8xf32>
    %74 = arith.subf %70, %73 : vector<2x8x8xf32>
    %75 = math.exp %74 : vector<2x8x8xf32>
    %cst_33 = arith.constant dense<0.000000e+00> : vector<2x8xf32>
    %76 = vector.multi_reduction <add>, %75, %cst_33 [2] : vector<2x8x8xf32> to vector<2x8xf32>
    %77 = vector.shape_cast %76 : vector<2x8xf32> to vector<2x8x1xf32>
    %78 = vector.broadcast %77 : vector<2x8x1xf32> to vector<2x8x8xf32>
    %79 = arith.divf %75, %78 : vector<2x8x8xf32>
    "tpu.trace_start"() <{level = 10 : i32, message = "bqk,bkd->bqd"}> : () -> ()
    %cst_34 = arith.constant dense<0.000000e+00> : vector<2x8x16xf32>
    %80 = tpu.matmul %79, %67, %cst_34 {dimension_numbers = #tpu.dot_dimension_numbers<[2], [1], [1], [2], [0, 0, 0, 1, 1, 2], [0], [0]>} : vector<2x8x8xf32>, vector<2x8x16xf32>, vector<2x8x16xf32> -> vector<2x8x16xf32>
    "tpu.trace_stop"() : () -> ()
    %81 = vector.shape_cast %80 : vector<2x8x16xf32> to vector<16x16xf32>
    %82 = tpu.concatenate %61, %81 in 1 : vector<16x16xf32>, vector<16x16xf32> -> vector<16x32xf32>
    %83 = arith.truncf %82 : vector<16x32xf32> to vector<16x32xbf16>
    %84 = vector.extract_strided_slice %35 {offsets = [0, 0], sizes = [32, 32], strides = [1, 1]} : vector<160x32xbf16> to vector<32x32xbf16>
    %cst_35 = arith.constant dense<0.000000e+00> : vector<16x32xf32>
    %85 = tpu.matmul %83, %84, %cst_35 {dimension_numbers = #tpu.dot_dimension_numbers<[1], [0], [0], [1], [0, 0, 1, 1], [], []>} : vector<16x32xbf16>, vector<32x32xbf16>, vector<16x32xf32> -> vector<16x32xf32>
    %86 = vector.broadcast %27 : vector<1x32xf32> to vector<16x32xf32>
    %87 = arith.addf %85, %86 : vector<16x32xf32>
    %88 = arith.addf %87, %25 : vector<16x32xf32>
    %cst_36 = arith.constant dense<0.000000e+00> : vector<16xf32>
    %89 = vector.multi_reduction <add>, %88, %cst_36 [1] : vector<16x32xf32> to vector<16xf32>
    %90 = vector.shape_cast %89 : vector<16xf32> to vector<16x1xf32>
    %cst_37 = arith.constant 3.200000e+01 : f32
    %91 = vector.broadcast %cst_37 : f32 to vector<16x1xf32>
    %92 = arith.divf %90, %91 : vector<16x1xf32>
    %93 = vector.broadcast %92 : vector<16x1xf32> to vector<16x32xf32>
    %94 = arith.subf %88, %93 : vector<16x32xf32>
    %95 = arith.mulf %94, %94 : vector<16x32xf32>
    %cst_38 = arith.constant dense<0.000000e+00> : vector<16xf32>
    %96 = vector.multi_reduction <add>, %95, %cst_38 [1] : vector<16x32xf32> to vector<16xf32>
    %97 = vector.shape_cast %96 : vector<16xf32> to vector<16x1xf32>
    %cst_39 = arith.constant 3.200000e+01 : f32
    %98 = vector.broadcast %cst_39 : f32 to vector<16x1xf32>
    %99 = arith.divf %97, %98 : vector<16x1xf32>
    %100 = vector.broadcast %92 : vector<16x1xf32> to vector<16x32xf32>
    %101 = arith.subf %88, %100 : vector<16x32xf32>
    %cst_40 = arith.constant 9.99999996E-13 : f32
    %102 = vector.broadcast %cst_40 : f32 to vector<16x1xf32>
    %103 = arith.addf %99, %102 : vector<16x1xf32>
    %104 = math.rsqrt %103 : vector<16x1xf32>
    %105 = vector.broadcast %104 : vector<16x1xf32> to vector<16x32xf32>
    %106 = arith.mulf %101, %105 : vector<16x32xf32>
    %107 = vector.broadcast %28 : vector<1x32xf32> to vector<16x32xf32>
    %108 = arith.mulf %106, %107 : vector<16x32xf32>
    %109 = vector.broadcast %29 : vector<1x32xf32> to vector<16x32xf32>
    %110 = arith.addf %108, %109 : vector<16x32xf32>
    %111 = arith.truncf %110 : vector<16x32xf32> to vector<16x32xbf16>
    %c0_41 = arith.constant 0 : index
    %c1_42 = arith.constant 1 : index
    %c0_43 = arith.constant 0 : index
    %c0_44 = arith.constant 0 : index
    %112 = vector.load %arg4[%c0_41, %c1_42, %c0_43, %c0_44] : memref<2x2x32x128xbf16, #tpu.memory_space<vmem>>, vector<1x1x32x128xbf16>
    %113 = vector.shape_cast %112 : vector<1x1x32x128xbf16> to vector<32x128xbf16>
    %cst_45 = arith.constant dense<0.000000e+00> : vector<16x128xf32>
    %114 = tpu.matmul %111, %113, %cst_45 {dimension_numbers = #tpu.dot_dimension_numbers<[1], [0], [0], [1], [0, 0, 1, 1], [], []>} : vector<16x32xbf16>, vector<32x128xbf16>, vector<16x128xf32> -> vector<16x128xf32>
    %115 = vector.broadcast %30 : vector<1x128xf32> to vector<16x128xf32>
    %116 = arith.addf %114, %115 : vector<16x128xf32>
    %cst_46 = arith.constant 5.000000e-01 : f32
    %117 = vector.broadcast %cst_46 : f32 to vector<16x128xf32>
    %118 = arith.mulf %117, %116 : vector<16x128xf32>
    %cst_47 = arith.constant 4.471500e-02 : f32
    %119 = vector.broadcast %cst_47 : f32 to vector<16x128xf32>
    %120 = arith.mulf %119, %116 : vector<16x128xf32>
    %121 = arith.mulf %120, %116 : vector<16x128xf32>
    %122 = arith.mulf %121, %116 : vector<16x128xf32>
    %123 = arith.addf %116, %122 : vector<16x128xf32>
    %cst_48 = arith.constant 0.797884583 : f32
    %124 = vector.broadcast %cst_48 : f32 to vector<16x128xf32>
    %125 = arith.mulf %124, %123 : vector<16x128xf32>
    %126 = math.tanh %125 : vector<16x128xf32>
    %cst_49 = arith.constant 1.000000e+00 : f32
    %127 = vector.broadcast %cst_49 : f32 to vector<16x128xf32>
    %128 = arith.addf %127, %126 : vector<16x128xf32>
    %129 = arith.mulf %118, %128 : vector<16x128xf32>
    %130 = arith.truncf %129 : vector<16x128xf32> to vector<16x128xbf16>
    %131 = vector.extract_strided_slice %35 {offsets = [32, 0], sizes = [128, 32], strides = [1, 1]} : vector<160x32xbf16> to vector<128x32xbf16>
    %cst_50 = arith.constant dense<0.000000e+00> : vector<16x32xf32>
    %132 = tpu.matmul %130, %131, %cst_50 {dimension_numbers = #tpu.dot_dimension_numbers<[1], [0], [0], [1], [0, 0, 1, 1], [], []>} : vector<16x128xbf16>, vector<128x32xbf16>, vector<16x32xf32> -> vector<16x32xf32>
    %133 = vector.broadcast %31 : vector<1x32xf32> to vector<16x32xf32>
    %134 = arith.addf %132, %133 : vector<16x32xf32>
    %135 = arith.addf %134, %110 : vector<16x32xf32>
    %cst_51 = arith.constant dense<0.000000e+00> : vector<16xf32>
    %136 = vector.multi_reduction <add>, %135, %cst_51 [1] : vector<16x32xf32> to vector<16xf32>
    %137 = vector.shape_cast %136 : vector<16xf32> to vector<16x1xf32>
    %cst_52 = arith.constant 3.200000e+01 : f32
    %138 = vector.broadcast %cst_52 : f32 to vector<16x1xf32>
    %139 = arith.divf %137, %138 : vector<16x1xf32>
    %140 = vector.broadcast %139 : vector<16x1xf32> to vector<16x32xf32>
    %141 = arith.subf %135, %140 : vector<16x32xf32>
    %142 = arith.mulf %141, %141 : vector<16x32xf32>
    %cst_53 = arith.constant dense<0.000000e+00> : vector<16xf32>
    %143 = vector.multi_reduction <add>, %142, %cst_53 [1] : vector<16x32xf32> to vector<16xf32>
    %144 = vector.shape_cast %143 : vector<16xf32> to vector<16x1xf32>
    %cst_54 = arith.constant 3.200000e+01 : f32
    %145 = vector.broadcast %cst_54 : f32 to vector<16x1xf32>
    %146 = arith.divf %144, %145 : vector<16x1xf32>
    %147 = vector.broadcast %139 : vector<16x1xf32> to vector<16x32xf32>
    %148 = arith.subf %135, %147 : vector<16x32xf32>
    %cst_55 = arith.constant 9.99999996E-13 : f32
    %149 = vector.broadcast %cst_55 : f32 to vector<16x1xf32>
    %150 = arith.addf %146, %149 : vector<16x1xf32>
    %151 = math.rsqrt %150 : vector<16x1xf32>
    %152 = vector.broadcast %151 : vector<16x1xf32> to vector<16x32xf32>
    %153 = arith.mulf %148, %152 : vector<16x32xf32>
    %154 = vector.broadcast %32 : vector<1x32xf32> to vector<16x32xf32>
    %155 = arith.mulf %153, %154 : vector<16x32xf32>
    %156 = vector.broadcast %33 : vector<1x32xf32> to vector<16x32xf32>
    %157 = arith.addf %155, %156 : vector<16x32xf32>
    %c10 = arith.constant 10 : index
    %c0_56 = arith.constant 0 : index
    %158 = vector.load %arg3[%c10, %c0_56] : memref<18x128xf32, #tpu.memory_space<vmem>>, vector<1x128xf32>
    %c11 = arith.constant 11 : index
    %c0_57 = arith.constant 0 : index
    %159 = vector.load %arg3[%c11, %c0_57] : memref<18x128xf32, #tpu.memory_space<vmem>>, vector<1x32xf32>
    %c12 = arith.constant 12 : index
    %c0_58 = arith.constant 0 : index
    %160 = vector.load %arg3[%c12, %c0_58] : memref<18x128xf32, #tpu.memory_space<vmem>>, vector<1x32xf32>
    %c13 = arith.constant 13 : index
    %c0_59 = arith.constant 0 : index
    %161 = vector.load %arg3[%c13, %c0_59] : memref<18x128xf32, #tpu.memory_space<vmem>>, vector<1x32xf32>
    %c14 = arith.constant 14 : index
    %c0_60 = arith.constant 0 : index
    %162 = vector.load %arg3[%c14, %c0_60] : memref<18x128xf32, #tpu.memory_space<vmem>>, vector<1x128xf32>
    %c15 = arith.constant 15 : index
    %c0_61 = arith.constant 0 : index
    %163 = vector.load %arg3[%c15, %c0_61] : memref<18x128xf32, #tpu.memory_space<vmem>>, vector<1x32xf32>
    %c16 = arith.constant 16 : index
    %c0_62 = arith.constant 0 : index
    %164 = vector.load %arg3[%c16, %c0_62] : memref<18x128xf32, #tpu.memory_space<vmem>>, vector<1x32xf32>
    %c17 = arith.constant 17 : index
    %c0_63 = arith.constant 0 : index
    %165 = vector.load %arg3[%c17, %c0_63] : memref<18x128xf32, #tpu.memory_space<vmem>>, vector<1x32xf32>
    %c1_64 = arith.constant 1 : index
    %c0_65 = arith.constant 0 : index
    %c0_66 = arith.constant 0 : index
    %166 = vector.load %arg5[%c1_64, %c0_65, %c0_66] : memref<2x160x32xbf16, #tpu.memory_space<vmem>>, vector<1x160x32xbf16>
    %167 = vector.shape_cast %166 : vector<1x160x32xbf16> to vector<160x32xbf16>
    %168 = arith.truncf %157 : vector<16x32xf32> to vector<16x32xbf16>
    %c1_67 = arith.constant 1 : index
    %c0_68 = arith.constant 0 : index
    %c0_69 = arith.constant 0 : index
    %c0_70 = arith.constant 0 : index
    %169 = vector.load %arg4[%c1_67, %c0_68, %c0_69, %c0_70] : memref<2x2x32x128xbf16, #tpu.memory_space<vmem>>, vector<1x1x32x128xbf16>
    %170 = vector.shape_cast %169 : vector<1x1x32x128xbf16> to vector<32x128xbf16>
    %cst_71 = arith.constant dense<0.000000e+00> : vector<16x128xf32>
    %171 = tpu.matmul %168, %170, %cst_71 {dimension_numbers = #tpu.dot_dimension_numbers<[1], [0], [0], [1], [0, 0, 1, 1], [], []>} : vector<16x32xbf16>, vector<32x128xbf16>, vector<16x128xf32> -> vector<16x128xf32>
    %172 = vector.broadcast %158 : vector<1x128xf32> to vector<16x128xf32>
    %173 = arith.addf %171, %172 : vector<16x128xf32>
    %174 = vector.extract_strided_slice %173 {offsets = [0, 0], sizes = [16, 16], strides = [1, 1]} : vector<16x128xf32> to vector<16x16xf32>
    %175 = vector.shape_cast %174 : vector<16x16xf32> to vector<2x8x16xf32>
    %176 = vector.extract_strided_slice %173 {offsets = [0, 32], sizes = [16, 16], strides = [1, 1]} : vector<16x128xf32> to vector<16x16xf32>
    %177 = vector.shape_cast %176 : vector<16x16xf32> to vector<2x8x16xf32>
    %178 = vector.extract_strided_slice %173 {offsets = [0, 64], sizes = [16, 16], strides = [1, 1]} : vector<16x128xf32> to vector<16x16xf32>
    %179 = vector.shape_cast %178 : vector<16x16xf32> to vector<2x8x16xf32>
    "tpu.trace_start"() <{level = 10 : i32, message = "bqd,bkd->bqk"}> : () -> ()
    %cst_72 = arith.constant dense<0.000000e+00> : vector<2x8x8xf32>
    %180 = tpu.matmul %175, %177, %cst_72 {dimension_numbers = #tpu.dot_dimension_numbers<[2], [2], [1], [1], [0, 0, 0, 1, 1, 1], [0], [0]>} : vector<2x8x16xf32>, vector<2x8x16xf32>, vector<2x8x8xf32> -> vector<2x8x8xf32>
    "tpu.trace_stop"() : () -> ()
    %181 = vector.broadcast %0 : vector<2x1x8xf32> to vector<2x8x8xf32>
    %182 = arith.addf %180, %181 : vector<2x8x8xf32>
    %cst_73 = arith.constant dense<0xFF800000> : vector<2x8xf32>
    %183 = vector.multi_reduction <maximumf>, %182, %cst_73 [2] : vector<2x8x8xf32> to vector<2x8xf32>
    %184 = vector.shape_cast %183 : vector<2x8xf32> to vector<2x8x1xf32>
    %185 = vector.broadcast %184 : vector<2x8x1xf32> to vector<2x8x8xf32>
    %186 = arith.subf %182, %185 : vector<2x8x8xf32>
    %187 = math.exp %186 : vector<2x8x8xf32>
    %cst_74 = arith.constant dense<0.000000e+00> : vector<2x8xf32>
    %188 = vector.multi_reduction <add>, %187, %cst_74 [2] : vector<2x8x8xf32> to vector<2x8xf32>
    %189 = vector.shape_cast %188 : vector<2x8xf32> to vector<2x8x1xf32>
    %190 = vector.broadcast %189 : vector<2x8x1xf32> to vector<2x8x8xf32>
    %191 = arith.divf %187, %190 : vector<2x8x8xf32>
    "tpu.trace_start"() <{level = 10 : i32, message = "bqk,bkd->bqd"}> : () -> ()
    %cst_75 = arith.constant dense<0.000000e+00> : vector<2x8x16xf32>
    %192 = tpu.matmul %191, %179, %cst_75 {dimension_numbers = #tpu.dot_dimension_numbers<[2], [1], [1], [2], [0, 0, 0, 1, 1, 2], [0], [0]>} : vector<2x8x8xf32>, vector<2x8x16xf32>, vector<2x8x16xf32> -> vector<2x8x16xf32>
    "tpu.trace_stop"() : () -> ()
    %193 = vector.shape_cast %192 : vector<2x8x16xf32> to vector<16x16xf32>
    %194 = vector.extract_strided_slice %173 {offsets = [0, 16], sizes = [16, 16], strides = [1, 1]} : vector<16x128xf32> to vector<16x16xf32>
    %195 = vector.shape_cast %194 : vector<16x16xf32> to vector<2x8x16xf32>
    %196 = vector.extract_strided_slice %173 {offsets = [0, 48], sizes = [16, 16], strides = [1, 1]} : vector<16x128xf32> to vector<16x16xf32>
    %197 = vector.shape_cast %196 : vector<16x16xf32> to vector<2x8x16xf32>
    %198 = vector.extract_strided_slice %173 {offsets = [0, 80], sizes = [16, 16], strides = [1, 1]} : vector<16x128xf32> to vector<16x16xf32>
    %199 = vector.shape_cast %198 : vector<16x16xf32> to vector<2x8x16xf32>
    "tpu.trace_start"() <{level = 10 : i32, message = "bqd,bkd->bqk"}> : () -> ()
    %cst_76 = arith.constant dense<0.000000e+00> : vector<2x8x8xf32>
    %200 = tpu.matmul %195, %197, %cst_76 {dimension_numbers = #tpu.dot_dimension_numbers<[2], [2], [1], [1], [0, 0, 0, 1, 1, 1], [0], [0]>} : vector<2x8x16xf32>, vector<2x8x16xf32>, vector<2x8x8xf32> -> vector<2x8x8xf32>
    "tpu.trace_stop"() : () -> ()
    %201 = vector.broadcast %0 : vector<2x1x8xf32> to vector<2x8x8xf32>
    %202 = arith.addf %200, %201 : vector<2x8x8xf32>
    %cst_77 = arith.constant dense<0xFF800000> : vector<2x8xf32>
    %203 = vector.multi_reduction <maximumf>, %202, %cst_77 [2] : vector<2x8x8xf32> to vector<2x8xf32>
    %204 = vector.shape_cast %203 : vector<2x8xf32> to vector<2x8x1xf32>
    %205 = vector.broadcast %204 : vector<2x8x1xf32> to vector<2x8x8xf32>
    %206 = arith.subf %202, %205 : vector<2x8x8xf32>
    %207 = math.exp %206 : vector<2x8x8xf32>
    %cst_78 = arith.constant dense<0.000000e+00> : vector<2x8xf32>
    %208 = vector.multi_reduction <add>, %207, %cst_78 [2] : vector<2x8x8xf32> to vector<2x8xf32>
    %209 = vector.shape_cast %208 : vector<2x8xf32> to vector<2x8x1xf32>
    %210 = vector.broadcast %209 : vector<2x8x1xf32> to vector<2x8x8xf32>
    %211 = arith.divf %207, %210 : vector<2x8x8xf32>
    "tpu.trace_start"() <{level = 10 : i32, message = "bqk,bkd->bqd"}> : () -> ()
    %cst_79 = arith.constant dense<0.000000e+00> : vector<2x8x16xf32>
    %212 = tpu.matmul %211, %199, %cst_79 {dimension_numbers = #tpu.dot_dimension_numbers<[2], [1], [1], [2], [0, 0, 0, 1, 1, 2], [0], [0]>} : vector<2x8x8xf32>, vector<2x8x16xf32>, vector<2x8x16xf32> -> vector<2x8x16xf32>
    "tpu.trace_stop"() : () -> ()
    %213 = vector.shape_cast %212 : vector<2x8x16xf32> to vector<16x16xf32>
    %214 = tpu.concatenate %193, %213 in 1 : vector<16x16xf32>, vector<16x16xf32> -> vector<16x32xf32>
    %215 = arith.truncf %214 : vector<16x32xf32> to vector<16x32xbf16>
    %216 = vector.extract_strided_slice %167 {offsets = [0, 0], sizes = [32, 32], strides = [1, 1]} : vector<160x32xbf16> to vector<32x32xbf16>
    %cst_80 = arith.constant dense<0.000000e+00> : vector<16x32xf32>
    %217 = tpu.matmul %215, %216, %cst_80 {dimension_numbers = #tpu.dot_dimension_numbers<[1], [0], [0], [1], [0, 0, 1, 1], [], []>} : vector<16x32xbf16>, vector<32x32xbf16>, vector<16x32xf32> -> vector<16x32xf32>
    %218 = vector.broadcast %159 : vector<1x32xf32> to vector<16x32xf32>
    %219 = arith.addf %217, %218 : vector<16x32xf32>
    %220 = arith.addf %219, %157 : vector<16x32xf32>
    %cst_81 = arith.constant dense<0.000000e+00> : vector<16xf32>
    %221 = vector.multi_reduction <add>, %220, %cst_81 [1] : vector<16x32xf32> to vector<16xf32>
    %222 = vector.shape_cast %221 : vector<16xf32> to vector<16x1xf32>
    %cst_82 = arith.constant 3.200000e+01 : f32
    %223 = vector.broadcast %cst_82 : f32 to vector<16x1xf32>
    %224 = arith.divf %222, %223 : vector<16x1xf32>
    %225 = vector.broadcast %224 : vector<16x1xf32> to vector<16x32xf32>
    %226 = arith.subf %220, %225 : vector<16x32xf32>
    %227 = arith.mulf %226, %226 : vector<16x32xf32>
    %cst_83 = arith.constant dense<0.000000e+00> : vector<16xf32>
    %228 = vector.multi_reduction <add>, %227, %cst_83 [1] : vector<16x32xf32> to vector<16xf32>
    %229 = vector.shape_cast %228 : vector<16xf32> to vector<16x1xf32>
    %cst_84 = arith.constant 3.200000e+01 : f32
    %230 = vector.broadcast %cst_84 : f32 to vector<16x1xf32>
    %231 = arith.divf %229, %230 : vector<16x1xf32>
    %232 = vector.broadcast %224 : vector<16x1xf32> to vector<16x32xf32>
    %233 = arith.subf %220, %232 : vector<16x32xf32>
    %cst_85 = arith.constant 9.99999996E-13 : f32
    %234 = vector.broadcast %cst_85 : f32 to vector<16x1xf32>
    %235 = arith.addf %231, %234 : vector<16x1xf32>
    %236 = math.rsqrt %235 : vector<16x1xf32>
    %237 = vector.broadcast %236 : vector<16x1xf32> to vector<16x32xf32>
    %238 = arith.mulf %233, %237 : vector<16x32xf32>
    %239 = vector.broadcast %160 : vector<1x32xf32> to vector<16x32xf32>
    %240 = arith.mulf %238, %239 : vector<16x32xf32>
    %241 = vector.broadcast %161 : vector<1x32xf32> to vector<16x32xf32>
    %242 = arith.addf %240, %241 : vector<16x32xf32>
    %243 = arith.truncf %242 : vector<16x32xf32> to vector<16x32xbf16>
    %c1_86 = arith.constant 1 : index
    %c1_87 = arith.constant 1 : index
    %c0_88 = arith.constant 0 : index
    %c0_89 = arith.constant 0 : index
    %244 = vector.load %arg4[%c1_86, %c1_87, %c0_88, %c0_89] : memref<2x2x32x128xbf16, #tpu.memory_space<vmem>>, vector<1x1x32x128xbf16>
    %245 = vector.shape_cast %244 : vector<1x1x32x128xbf16> to vector<32x128xbf16>
    %cst_90 = arith.constant dense<0.000000e+00> : vector<16x128xf32>
    %246 = tpu.matmul %243, %245, %cst_90 {dimension_numbers = #tpu.dot_dimension_numbers<[1], [0], [0], [1], [0, 0, 1, 1], [], []>} : vector<16x32xbf16>, vector<32x128xbf16>, vector<16x128xf32> -> vector<16x128xf32>
    %247 = vector.broadcast %162 : vector<1x128xf32> to vector<16x128xf32>
    %248 = arith.addf %246, %247 : vector<16x128xf32>
    %cst_91 = arith.constant 5.000000e-01 : f32
    %249 = vector.broadcast %cst_91 : f32 to vector<16x128xf32>
    %250 = arith.mulf %249, %248 : vector<16x128xf32>
    %cst_92 = arith.constant 4.471500e-02 : f32
    %251 = vector.broadcast %cst_92 : f32 to vector<16x128xf32>
    %252 = arith.mulf %251, %248 : vector<16x128xf32>
    %253 = arith.mulf %252, %248 : vector<16x128xf32>
    %254 = arith.mulf %253, %248 : vector<16x128xf32>
    %255 = arith.addf %248, %254 : vector<16x128xf32>
    %cst_93 = arith.constant 0.797884583 : f32
    %256 = vector.broadcast %cst_93 : f32 to vector<16x128xf32>
    %257 = arith.mulf %256, %255 : vector<16x128xf32>
    %258 = math.tanh %257 : vector<16x128xf32>
    %cst_94 = arith.constant 1.000000e+00 : f32
    %259 = vector.broadcast %cst_94 : f32 to vector<16x128xf32>
    %260 = arith.addf %259, %258 : vector<16x128xf32>
    %261 = arith.mulf %250, %260 : vector<16x128xf32>
    %262 = arith.truncf %261 : vector<16x128xf32> to vector<16x128xbf16>
    %263 = vector.extract_strided_slice %167 {offsets = [32, 0], sizes = [128, 32], strides = [1, 1]} : vector<160x32xbf16> to vector<128x32xbf16>
    %cst_95 = arith.constant dense<0.000000e+00> : vector<16x32xf32>
    %264 = tpu.matmul %262, %263, %cst_95 {dimension_numbers = #tpu.dot_dimension_numbers<[1], [0], [0], [1], [0, 0, 1, 1], [], []>} : vector<16x128xbf16>, vector<128x32xbf16>, vector<16x32xf32> -> vector<16x32xf32>
    %265 = vector.broadcast %163 : vector<1x32xf32> to vector<16x32xf32>
    %266 = arith.addf %264, %265 : vector<16x32xf32>
    %267 = arith.addf %266, %242 : vector<16x32xf32>
    %cst_96 = arith.constant dense<0.000000e+00> : vector<16xf32>
    %268 = vector.multi_reduction <add>, %267, %cst_96 [1] : vector<16x32xf32> to vector<16xf32>
    %269 = vector.shape_cast %268 : vector<16xf32> to vector<16x1xf32>
    %cst_97 = arith.constant 3.200000e+01 : f32
    %270 = vector.broadcast %cst_97 : f32 to vector<16x1xf32>
    %271 = arith.divf %269, %270 : vector<16x1xf32>
    %272 = vector.broadcast %271 : vector<16x1xf32> to vector<16x32xf32>
    %273 = arith.subf %267, %272 : vector<16x32xf32>
    %274 = arith.mulf %273, %273 : vector<16x32xf32>
    %cst_98 = arith.constant dense<0.000000e+00> : vector<16xf32>
    %275 = vector.multi_reduction <add>, %274, %cst_98 [1] : vector<16x32xf32> to vector<16xf32>
    %276 = vector.shape_cast %275 : vector<16xf32> to vector<16x1xf32>
    %cst_99 = arith.constant 3.200000e+01 : f32
    %277 = vector.broadcast %cst_99 : f32 to vector<16x1xf32>
    %278 = arith.divf %276, %277 : vector<16x1xf32>
    %279 = vector.broadcast %271 : vector<16x1xf32> to vector<16x32xf32>
    %280 = arith.subf %267, %279 : vector<16x32xf32>
    %cst_100 = arith.constant 9.99999996E-13 : f32
    %281 = vector.broadcast %cst_100 : f32 to vector<16x1xf32>
    %282 = arith.addf %278, %281 : vector<16x1xf32>
    %283 = math.rsqrt %282 : vector<16x1xf32>
    %284 = vector.broadcast %283 : vector<16x1xf32> to vector<16x32xf32>
    %285 = arith.mulf %280, %284 : vector<16x32xf32>
    %286 = vector.broadcast %164 : vector<1x32xf32> to vector<16x32xf32>
    %287 = arith.mulf %285, %286 : vector<16x32xf32>
    %288 = vector.broadcast %165 : vector<1x32xf32> to vector<16x32xf32>
    %289 = arith.addf %287, %288 : vector<16x32xf32>
    %c0_101 = arith.constant 0 : index
    %c0_102 = arith.constant 0 : index
    %290 = vector.load %arg6[%c0_101, %c0_102] : memref<16x32xf32, #tpu.memory_space<vmem>>, vector<16x32xf32>
    tpu.vector_store %arg6[%c0_101, %c0_102], %289 {strides = array<i32>} : memref<16x32xf32, #tpu.memory_space<vmem>>, vector<16x32xf32>,
    return
  }
  func.func @transform_0(%arg0: i32) -> (i32, i32) {
    %c0_i32 = arith.constant 0 : i32
    %c0_i32_0 = arith.constant 0 : i32
    %c0_i32_1 = arith.constant 0 : i32
    return %c0_i32, %c0_i32_0 : i32, i32
  }
  func.func @transform_1(%arg0: i32) -> (i32, i32, i32) {
    %c0_i32 = arith.constant 0 : i32
    %c0_i32_0 = arith.constant 0 : i32
    %c0_i32_1 = arith.constant 0 : i32
    %c0_i32_2 = arith.constant 0 : i32
    return %c0_i32, %c0_i32_0, %c0_i32_1 : i32, i32, i32
  }
  func.func @transform_2(%arg0: i32) -> (i32, i32) {
    %c0_i32 = arith.constant 0 : i32
    %c0_i32_0 = arith.constant 0 : i32
    %c0_i32_1 = arith.constant 0 : i32
    return %c0_i32, %c0_i32_0 : i32, i32
  }
  func.func @transform_3(%arg0: i32) -> (i32, i32, i32, i32) {
    %c0_i32 = arith.constant 0 : i32
    %c0_i32_0 = arith.constant 0 : i32
    %c0_i32_1 = arith.constant 0 : i32
    %c0_i32_2 = arith.constant 0 : i32
    %c0_i32_3 = arith.constant 0 : i32
    return %c0_i32, %c0_i32_0, %c0_i32_1, %c0_i32_2 : i32, i32, i32, i32
  }
  func.func @transform_4(%arg0: i32) -> (i32, i32, i32) {
    %c0_i32 = arith.constant 0 : i32
    %c0_i32_0 = arith.constant 0 : i32
    %c0_i32_1 = arith.constant 0 : i32
    %c0_i32_2 = arith.constant 0 : i32
    return %c0_i32, %c0_i32_0, %c0_i32_1 : i32, i32, i32
  }
  func.func @transform_5(%arg0: i32) -> (i32, i32) {
    %c0_i32 = arith.constant 0 : i32
    %c0_i32_0 = arith.constant 0 : i32
    %c0_i32_1 = arith.constant 0 : i32
    return %c0_i32, %c0_i32_0 : i32, i32
  }
}

</mosaic_0001>

<bundles_post_ra>
// kernel: bert_forward.1
= control target key start
LH: loop header
LB: loop body
LE: loop exit
PB: predicated region body
PF: predicated region fallthrough
CT: control target
= control target key end

     0   :  { %vm28_vm0 = vcmask 261120   ;;  %s3200_s0 = inlined_call_operand.vmem [shape: f32[16,32], index: 0, kind: input, shape index: {}]   ;;  %s3201_s1 = inlined_call_operand.vmem [shape: f32[2,1,8], index: 1, kind: input, shape index: {}]   ;;  %s3202_s2 = inlined_call_operand.vmem [shape: f32[18,128], index: 2, kind: input, shape index: {}]   ;;  %s3203_s3 = inlined_call_operand.vmem [shape: bf16[2,2,32,128], index: 3, kind: input, shape index: {}]   ;;  %s3204_s4 = inlined_call_operand.vmem [shape: bf16[2,160,32], index: 4, kind: input, shape index: {}]   ;;  %s3205_s5 = inlined_call_operand.hbm [shape: f32[16,32], index: 5, kind: output, shape index: {}]  }
   0x1   :  { %v24_v0 = vld [vmem:[%s3200_s0] sm:$0xff]  ;;  %v25_v1 = vld [vmem:[%s3200_s0 + $0x8] sm:$0xff] }
   0x2   :  { %v29_v2 = vsel %vm28_vm0, %v24_v0, 0.0  ;;  %v32_v3 = vsel %vm28_vm0, %v25_v1, 0.0 }
   0x3   :  { %30 = vadd.xlane.f32.xlu0 %v29_v2 }
   0x7   :  { %33 = vadd.xlane.f32.xlu0 %v32_v3 }
   0x8   :  { %10 = vsyncpa [#allocation3], 0  ;;  %v2629_v14 = vld [vmem:[%s3203_s3 + $0x8] sm:$0xff]   ;;  %v2739_v15 = vmov 0.0   ;;  %vm2740_vm1 = vmmov 0   ;;  %v2630_v16 = vld [vmem:[%s3203_s3] sm:$0xff]  }
   0x9   :  { %2440 = vmatprep.subr.bf16.mxu0 %v2739_v15  ;;  %2444 = vmatprep.mubr.msk.bf16.mxu0 %vm2740_vm1, %v2739_v15  ;;  %v2262_v25 = vld [vmem:[%s3202_s2] ss:$0 sm:$0xff]  ;;  %v2263_v29 = vld [vmem:[%s3202_s2 + $0x1] ss:$0 sm:$0xff]  ;;  %v2264_v34 = vld [vmem:[%s3202_s2 + $0x2] ss:$0 sm:$0xff] }
   0xa   :  { %2441 = vmatpush3.bf16.msra.mxu0 %v2629_v14  ;;  %2448 = vmatprep.subr.mxu1 %v2739_v15  ;;  %s2741_s6 = smov 96   ;;  %vm176_vm2 = vcmask 130048   ;;  %v2845_v43 = vld [vmem:[%s3201_s1] ss:$0 sm:$0xff]  ;;  %vm328_vm3 = vcmask 64512   ;;  %s2742_s11 = smov 64  }
   0xb   :  { %2442 = vmatprep.subr.bf16.mxu0 %v2739_v15  ;;  %2450 = vmatprep.mubr.msk.f32.mxu1 %vm2740_vm1, %v2739_v15  ;;  %v2851_v47 = vld [vmem:[%s3201_s1 + $0x1] ss:$0 sm:$0xff]  ;;  %s2743_s12 = smov 80   ;;  %s2744_s1 = smov 112  }
   0xc   :  { %s2745_s13 = smov 48   ;;  %s2746_s18 = smov 16  }
   0xd   :  { %s2747_s20 = smov [#allocation2]  }
   0xe   :  { %2443 = vmatpush3.bf16.msra.mxu0 %v2630_v16  ;;  %s2251_s21 = sshll.u32 %s2747_s20, 4  ;;  %s2252_s21 = int_to_ptr.vmem [resolvable:$true] %s2251_s21 }
   0xf   :  { %2463 = vmatprep.subr.mxu0 %v2739_v15  ;;  %s2717_s0 = scalar_lea.vmem %s2252_s21, 256  ;;  %p2722_p1 = scmp.lt.s32.totalorder %s2252_s21, %s2252_s21 }
  0x10   :  { %p2718_p0 = scmp.ne.s32.totalorder %s2252_s21, %s2717_s0  ;;  %p2723_p2 = scmp.lt.s32.totalorder %s2717_s0, %s2717_s0 }
  0x12   :  { %p2724_p3 = por %p2723_p2, %p2722_p1 }
  0x14   :  { %p2725_p4 = pnand %p2724_p3, %p2718_p0 }
  0x8c   :  { %v31_v4 = vpop.xlane.xlu0 %30 }
  0x8d   :  { %v36_v5 = vmul.f32 0.03125, %v31_v4 }
  0x8f   :  { %v38_v6 = vsub.f32 %v24_v0, %v36_v5 }
  0x90   :  { %v34_v7 = vpop.xlane.xlu0 %33 }
  0x91   :  { %v37_v8 = vmul.f32 0.03125, %v34_v7  ;;  %v40_v9 = vmul.f32 %v38_v6, %v38_v6 }
  0x93   :  { %v39_v10 = vsub.f32 %v25_v1, %v37_v8  ;;  %v42_v11 = vsel %vm28_vm0, %v40_v9, 0.0 }
  0x94   :  { %43 = vadd.xlane.f32.xlu1 %v42_v11 }
  0x95   :  { %v41_v12 = vmul.f32 %v39_v10, %v39_v10 }
  0x97   :  { %v45_v13 = vsel %vm28_vm0, %v41_v12, 0.0 }
  0x98   :  { %46 = vadd.xlane.f32.xlu1 %v45_v13 }
 0x11d   :  { %v44_v17 = vpop.xlane.xlu1 %43 }
 0x11e   :  { %v48_v18 = vmul.f32 0.03125, %v44_v17 }
 0x120   :  { %v50_v19 = vadd.f32 1e-12, %v48_v18 }
 0x121   :  { %v47_v20 = vpop.xlane.xlu1 %46 }
 0x122   :  { %2657 = vrsqrt.f32 %v50_v19  ;;  %v49_v21 = vmul.f32 0.03125, %v47_v20 }
 0x124   :  { %v51_v22 = vadd.f32 1e-12, %v49_v21 }
 0x126   :  { %2659 = vrsqrt.f32 %v51_v22 }
 0x12f   :  { %v2658_v23 = vpop.eup %2657 }
 0x130   :  { %v54_v24 = vmul.f32 %v2658_v23, %v38_v6 }
 0x132   :  { %v60_v28 = vmul.f32 %v2262_v25, %v54_v24 }
 0x133   :  { %v2660_v26 = vpop.eup %2659 }
 0x134   :  { %v55_v27 = vmul.f32 %v2660_v26, %v39_v10  ;;  %v2810_v31 = vadd.f32 %v2263_v29, %v60_v28 }
 0x136   :  { %v61_v30 = vmul.f32 %v2262_v25, %v55_v27 }
 0x138   :  { %v2812_v32 = vadd.f32 %v2263_v29, %v61_v30 }
 0x13a   :  { %v96_v33 = vpack.c.bf16 %v2812_v32, %v2810_v31 }
 0x13c   :  { %2445 = vmatmul.mubr.msk.bf16.vlgmr.msra.gmra.mxu0 %vm28_vm0, %v96_v33 }
 0x13d   :  { %2465 = vmatprep.mubr.msk.f32.mxu0 %vm2740_vm1, %v2739_v15 }
 0x1fc   :  { %v154_v35 = vpop.f32.mrf.mxu0 }
 0x1fd   :  { %v2822_v36 = vadd.f32 %v2264_v34, %v154_v35 }
 0x1fe   :  { %v2446_v37 = vpop.f32.mrf.mxu0 }
 0x1ff   :  { %174 = vrot.lane.b32.xlu0 %v2822_v36, %s2741_s6 }
 0x200   :  { %v157_v38 = vpop.f32.mrf.mxu0 }
 0x201   :  { %v2826_v39 = vadd.f32 %v2264_v34, %v157_v38 }
 0x202   :  { %v2447_v40 = vpop.f32.mrf.mxu0 }
 0x203   :  { %252 = vrot.lane.b32.xlu1 %v2826_v39, %s2741_s6 }
 0x271   :  { %v175_v41 = vpop.permute.xlu0 %174 }
 0x272   :  { %2449 = vmatpush3.xpose.msk.msra.mxu1 %vm176_vm2, %v175_v41 }
 0x273   :  { %2453 = vmatprep.subr.mxu1 %v2739_v15 }
 0x275   :  { %2451 = vmatmul.mubr.msk.f32.vlgmr.msra.gmra.mxu1 %vm176_vm2, %v2822_v36  ;;  %v253_v42 = vpop.permute.xlu1 %252 }
 0x276   :  { %2454 = vmatpush3.xpose.msk.msra.mxu1 %vm176_vm2, %v253_v42  ;;  %2455 = vmatprep.mubr.msk.f32.mxu1 %vm2740_vm1, %v2739_v15 }
 0x277   :  { %2458 = vmatprep.subr.mxu1 %v2739_v15 }
 0x279   :  { %2456 = vmatmul.mubr.msk.f32.vlgmr.msra.gmra.mxu1 %vm176_vm2, %v2826_v39 }
 0x27a   :  { %2460 = vmatprep.mubr.msk.f32.mxu1 %vm2740_vm1, %v2739_v15 }
 0x335   :  { %v247_v44 = vpop.f32.mrf.mxu1 }
 0x336   :  { %v248_v45 = vadd.f32 %v2845_v43, %v247_v44 }
 0x337   :  { %v2452_v46 = vpop.f32.mrf.mxu1 }
 0x338   :  { %v329_v48 = vsel %vm328_vm3, %v248_v45, -inf  ;;  %v2632_v46 = vld [vmem:[%s3204_s4] sm:$0xff]  }
 0x339   :  { %v324_v49 = vpop.f32.mrf.mxu1  ;;  %330 = vmax.xlane.f32.xlu1 %v329_v48 }
 0x33a   :  { %v325_v50 = vadd.f32 %v2851_v47, %v324_v49 }
 0x33b   :  { %v2457_v51 = vpop.f32.mrf.mxu1 }
 0x33c   :  { %v332_v52 = vsel %vm328_vm3, %v325_v50, -inf }
 0x33d   :  { %333 = vmax.xlane.f32.xlu0 %v332_v52 }
 0x34a   :  { %427 = vrot.lane.b32.xlu1 %v2826_v39, %s2742_s11 }
 0x34e   :  { %505 = vrot.lane.b32.xlu1 %v2822_v36, %s2743_s12 }
 0x352   :  { %583 = vrot.lane.b32.xlu1 %v2826_v39, %s2743_s12 }
 0x3c2   :  { %v331_v53 = vpop.xlane.xlu1 %330 }
 0x3c3   :  { %v335_v54 = vsub.f32 %v248_v45, %v331_v53 }
 0x3c5   :  { %v337_v55 = vmul.f32 1.442695, %v335_v54 }
 0x3c6   :  { %v334_v56 = vpop.xlane.xlu0 %333  ;;  %v428_v57 = vpop.permute.xlu1 %427 }
 0x3c7   :  { %2661 = vpow2.f32 %v337_v55  ;;  %v336_v58 = vsub.f32 %v325_v50, %v334_v56  ;;  %2464 = vmatpush3.msra.mxu0 %v428_v57 }
 0x3c8   :  { %2473 = vmatprep.subr.mxu0 %v2739_v15 }
 0x3c9   :  { %v339_v59 = vmul.f32 1.442695, %v336_v58 }
 0x3ca   :  { %v506_v0 = vpop.permute.xlu1 %505 }
 0x3cb   :  { %2663 = vpow2.f32 %v339_v59  ;;  %v2282_v59 = vld [vmem:[%s3202_s2 + $0x3] ss:$0 sm:$0xff] }
 0x3ce   :  { %v584_v1 = vpop.permute.xlu1 %583 }
 0x3d4   :  { %v2662_v60 = vpop.eup %2661 }
 0x3d5   :  { %v341_v61 = vsel %vm328_vm3, %v2662_v60, 0.0 }
 0x3d6   :  { %342 = vadd.xlane.f32.xlu0 %v341_v61 }
 0x3d8   :  { %v2664_v62 = vpop.eup %2663 }
 0x3d9   :  { %v344_v63 = vsel %vm328_vm3, %v2664_v62, 0.0 }
 0x3da   :  { %345 = vadd.xlane.f32.xlu1 %v344_v63 }
 0x3eb   :  { %581 = vrot.lane.b32.xlu1 %v2826_v39, %s2744_s1 }
 0x3ec   :  { %351 = vrot.lane.b32.xlu0 %v2822_v36, %s2742_s11 }
 0x3f0   :  { %503 = vrot.lane.b32.xlu0 %v2822_v36, %s2744_s1 }
 0x45f   :  { %v343_v2 = vpop.xlane.xlu0 %342 }
 0x460   :  { %2665 = vrcp.f32 %v343_v2 }
 0x463   :  { %v352_v3 = vpop.permute.xlu0 %351  ;;  %v346_v4 = vpop.xlane.xlu1 %345 }
 0x464   :  { %2667 = vrcp.f32 %v346_v4  ;;  %2459 = vmatpush3.msra.mxu1 %v352_v3 }
 0x465   :  { %2468 = vmatprep.subr.mxu1 %v2739_v15 }
 0x467   :  { %v504_v9 = vpop.permute.xlu0 %503  ;;  %v582_v10 = vpop.permute.xlu1 %581 }
 0x46d   :  { %v2666_v5 = vpop.eup %2665 }
 0x46e   :  { %v348_v6 = vmul.f32 %v2666_v5, %v2662_v60 }
 0x470   :  { %2461 = vmatmul.mubr.msk.f32.vlgmr.msra.gmra.mxu1 %vm328_vm3, %v348_v6 }
 0x471   :  { %v2668_v7 = vpop.eup %2667  ;;  %2469 = vmatpush3.xpose.msk.msra.mxu1 %vm176_vm2, %v506_v0  ;;  %2470 = vmatprep.mubr.msk.f32.mxu1 %vm2740_vm1, %v2739_v15 }
 0x472   :  { %v350_v8 = vmul.f32 %v2668_v7, %v2664_v62  ;;  %2478 = vmatprep.subr.mxu1 %v2739_v15 }
 0x474   :  { %2466 = vmatmul.mubr.msk.f32.vlgmr.msra.gmra.mxu0 %vm328_vm3, %v350_v8  ;;  %2471 = vmatmul.mubr.msk.f32.vlgmr.msra.gmra.mxu1 %vm176_vm2, %v504_v9 }
 0x475   :  { %2474 = vmatpush3.xpose.msk.msra.mxu0 %vm176_vm2, %v584_v1  ;;  %2475 = vmatprep.mubr.msk.f32.mxu0 %vm2740_vm1, %v2739_v15 }
 0x476   :  { %2483 = vmatprep.subr.mxu0 %v2739_v15  ;;  %2480 = vmatprep.mubr.msk.f32.mxu1 %vm2740_vm1, %v2739_v15 }
 0x478   :  { %2476 = vmatmul.mubr.msk.f32.vlgmr.msra.gmra.mxu0 %vm176_vm2, %v582_v10 }
 0x479   :  { %2485 = vmatprep.mubr.msk.f32.mxu0 %vm2740_vm1, %v2739_v15 }
 0x530   :  { %v2888_v11 = vpop.f32.mrf.mxu1 }
 0x532   :  { %v2462_v12 = vpop.f32.mrf.mxu1 }
 0x534   :  { %v2890_v13 = vpop.f32.mrf.mxu0  ;;  %v577_v14 = vpop.f32.mrf.mxu1 }
 0x535   :  { %v578_v16 = vadd.f32 %v2845_v43, %v577_v14 }
 0x536   :  { %v2467_v17 = vpop.f32.mrf.mxu0  ;;  %v2472_v18 = vpop.f32.mrf.mxu1 }
 0x537   :  { %v659_v19 = vsel %vm328_vm3, %v578_v16, -inf }
 0x538   :  { %660 = vmax.xlane.f32.xlu0 %v659_v19  ;;  %v655_v20 = vpop.f32.mrf.mxu0 }
 0x539   :  { %v656_v21 = vadd.f32 %v2851_v47, %v655_v20 }
 0x53a   :  { %v2477_v22 = vpop.f32.mrf.mxu0 }
 0x53b   :  { %v662_v23 = vsel %vm328_vm3, %v656_v21, -inf }
 0x53c   :  { %663 = vmax.xlane.f32.xlu1 %v662_v23 }
 0x54d   :  { %757 = vrot.lane.b32.xlu1 %v2826_v39, %s2745_s13 }
 0x5c1   :  { %v661_v24 = vpop.xlane.xlu0 %660 }
 0x5c2   :  { %v665_v25 = vsub.f32 %v578_v16, %v661_v24  ;;  %v2634_v16 = vld [vmem:[%s3203_s3 + $0x10] sm:$0xff]  }
 0x5c4   :  { %v667_v26 = vmul.f32 1.442695, %v665_v25  ;;  %v2286_v25 = vld [vmem:[%s3202_s2 + $0x4] ss:$0 sm:$0xff] }
 0x5c5   :  { %v664_v27 = vpop.xlane.xlu1 %663 }
 0x5c6   :  { %2669 = vpow2.f32 %v667_v26  ;;  %v666_v28 = vsub.f32 %v656_v21, %v664_v27 }
 0x5c8   :  { %v669_v29 = vmul.f32 1.442695, %v666_v28 }
 0x5c9   :  { %v758_v30 = vpop.permute.xlu1 %757 }
 0x5ca   :  { %2671 = vpow2.f32 %v669_v29  ;;  %2484 = vmatpush3.msra.mxu0 %v758_v30  ;;  %v2287_v29 = vld [vmem:[%s3202_s2 + $0x5] ss:$0 sm:$0xff] }
 0x5cb   :  { %2488 = vmatprep.subr.bf16.mxu0 %v2739_v15 }
 0x5d3   :  { %v2670_v33 = vpop.eup %2669 }
 0x5d4   :  { %v671_v34 = vsel %vm328_vm3, %v2670_v33, 0.0 }
 0x5d5   :  { %672 = vadd.xlane.f32.xlu0 %v671_v34 }
 0x5d7   :  { %v2672_v35 = vpop.eup %2671 }
 0x5d8   :  { %v674_v37 = vsel %vm328_vm3, %v2672_v35, 0.0 }
 0x5d9   :  { %675 = vadd.xlane.f32.xlu0 %v674_v37  ;;  %v2635_v37 = vld [vmem:[%s3204_s4 + $0x48] sm:$0xff]  }
 0x5ef   :  { %681 = vrot.lane.b32.xlu0 %v2822_v36, %s2745_s13  ;;  %v2631_v36 = vld [vmem:[%s3204_s4 + $0x8] sm:$0xff]  }
 0x65e   :  { %v673_v38 = vpop.xlane.xlu0 %672 }
 0x65f   :  { %2673 = vrcp.f32 %v673_v38  ;;  %v2636_v38 = vld [vmem:[%s3204_s4 + $0x40] sm:$0xff]  }
 0x662   :  { %v676_v39 = vpop.xlane.xlu0 %675 }
 0x663   :  { %2675 = vrcp.f32 %v676_v39  ;;  %v2637_v39 = vld [vmem:[%s3204_s4 + $0x38] sm:$0xff]  }
 0x666   :  { %v682_v40 = vpop.permute.xlu0 %681 }
 0x667   :  { %2479 = vmatpush3.msra.mxu1 %v682_v40  ;;  %v2638_v40 = vld [vmem:[%s3204_s4 + $0x30] sm:$0xff]  }
 0x668   :  { %2504 = vmatprep.subr.bf16.mxu1 %v2739_v15 }
 0x66c   :  { %v2674_v41 = vpop.eup %2673 }
 0x66d   :  { %v678_v42 = vmul.f32 %v2674_v41, %v2670_v33  ;;  %v2639_v41 = vld [vmem:[%s3204_s4 + $0x28] sm:$0xff]  }
 0x66f   :  { %2481 = vmatmul.mubr.msk.f32.vlgmr.msra.gmra.mxu1 %vm328_vm3, %v678_v42  ;;  %v2640_v42 = vld [vmem:[%s3204_s4 + $0x20] sm:$0xff]  }
 0x670   :  { %v2676_v44 = vpop.eup %2675  ;;  %2520 = vmatprep.mubr.msk.bf16.mxu1 %vm2740_vm1, %v2739_v15  ;;  %2505 = vmatpush3.bf16.msra.mxu1 %v2635_v37 }
 0x671   :  { %v680_v45 = vmul.f32 %v2676_v44, %v2672_v35  ;;  %2506 = vmatprep.subr.bf16.mxu1 %v2739_v15  ;;  %v2641_v44 = vld [vmem:[%s3204_s4 + $0x18] sm:$0xff]  }
 0x673   :  { %2486 = vmatmul.mubr.msk.f32.vlgmr.msra.gmra.mxu0 %vm328_vm3, %v680_v45  ;;  %v2642_v45 = vld [vmem:[%s3204_s4 + $0x10] sm:$0xff]  }
 0x674   :  { %2492 = vmatprep.mubr.msk.bf16.mxu0 %vm2740_vm1, %v2739_v15  ;;  %2489 = vmatpush3.bf16.msra.mxu0 %v2631_v36  ;;  %v2292_v36 = vld [vmem:[%s3202_s2 + $0x6] ss:$0 sm:$0xff] }
 0x675   :  { %2490 = vmatprep.subr.bf16.mxu0 %v2739_v15  ;;  %2507 = vmatpush3.bf16.msra.mxu1 %v2636_v38 }
 0x676   :  { %2508 = vmatprep.subr.bf16.mxu1 %v2739_v15 }
 0x678   :  { %2491 = vmatpush3.bf16.msra.mxu0 %v2632_v46 }
 0x679   :  { %2496 = vmatprep.subr.bf16.mxu0 %v2739_v15  ;;  %2509 = vmatpush3.bf16.msra.mxu1 %v2637_v39 }
 0x67a   :  { %2510 = vmatprep.subr.bf16.mxu1 %v2739_v15 }
 0x67d   :  { %2511 = vmatpush3.bf16.msra.mxu1 %v2638_v40 }
 0x67e   :  { %2512 = vmatprep.subr.bf16.mxu1 %v2739_v15 }
 0x681   :  { %2513 = vmatpush3.bf16.msra.mxu1 %v2639_v41  ;;  %v2305_v41 = vld [vmem:[%s3202_s2 + $0x8] ss:$0 sm:$0xff] }
 0x682   :  { %2514 = vmatprep.subr.bf16.mxu1 %v2739_v15 }
 0x685   :  { %2515 = vmatpush3.bf16.msra.mxu1 %v2640_v42 }
 0x686   :  { %2516 = vmatprep.subr.bf16.mxu1 %v2739_v15 }
 0x689   :  { %2517 = vmatpush3.bf16.msra.mxu1 %v2641_v44 }
 0x68a   :  { %2518 = vmatprep.subr.bf16.mxu1 %v2739_v15 }
 0x68d   :  { %2519 = vmatpush3.bf16.msra.mxu1 %v2642_v45 }
 0x68e   :  { %2572 = vmatprep.subr.bf16.mxu1 %v2739_v15 }
 0x72f   :  { %v753_v48 = vpop.f32.mrf.mxu1 }
 0x731   :  { %v2482_v49 = vpop.f32.mrf.mxu1 }
 0x733   :  { %v829_v50 = vpop.f32.mrf.mxu0 }
 0x734   :  { %v2619_v51 = vpack.i.bf16 %v829_v50, %v753_v48 }
 0x735   :  { %v2487_v52 = vpop.f32.mrf.mxu0 }
 0x736   :  { %2620 = vrot.lane.b32.xlu1 %v2619_v51, %s2746_s18 }
 0x7a8   :  { %v2621_v53 = vpop.permute.xlu1 %2620 }
 0x7a9   :  { %v2623_v54 = vunpack.i.h.bf16 %v2621_v53  ;;  %v2622_v55 = vunpack.i.l.bf16 %v2621_v53 }
 0x7ab   :  { %v842_v56 = vsel %vm176_vm2, %v2890_v13, %v2623_v54  ;;  %v841_v57 = vsel %vm176_vm2, %v2888_v11, %v2622_v55 }
 0x7ac   :  { %v843_v58 = vpack.c.bf16 %v842_v56, %v841_v57 }
 0x7ae   :  { %2493 = vmatmul.mubr.msk.bf16.vlgmr.msra.gmra.mxu0 %vm28_vm0, %v843_v58 }
 0x7af   :  { %2500 = vmatprep.mubr.msk.bf16.mxu0 %vm2740_vm1, %v2739_v15 }
 0x86e   :  { %v897_v60 = vpop.f32.mrf.mxu0 }
 0x86f   :  { %v898_v61 = vadd.f32 %v2282_v59, %v897_v60 }
 0x870   :  { %v2494_v62 = vpop.f32.mrf.mxu0 }
 0x871   :  { %v904_v63 = vadd.f32 %v898_v61, %v2810_v31 }
 0x872   :  { %v900_v0 = vpop.f32.mrf.mxu0 }
 0x873   :  { %v901_v1 = vadd.f32 %v2282_v59, %v900_v0  ;;  %v906_v2 = vsel %vm28_vm0, %v904_v63, 0.0 }
 0x874   :  { %907 = vadd.xlane.f32.xlu1 %v906_v2  ;;  %v2495_v3 = vpop.f32.mrf.mxu0 }
 0x875   :  { %v905_v4 = vadd.f32 %v901_v1, %v2812_v32  ;;  %v2633_v32 = vld [vmem:[%s3203_s3 + $0x18] sm:$0xff]  }
 0x876   :  { %2497 = vmatpush3.bf16.msra.mxu0 %v2633_v32 }
 0x877   :  { %v909_v5 = vsel %vm28_vm0, %v905_v4, 0.0  ;;  %2498 = vmatprep.subr.bf16.mxu0 %v2739_v15 }
 0x878   :  { %910 = vadd.xlane.f32.xlu0 %v909_v5 }
 0x87a   :  { %2499 = vmatpush3.bf16.msra.mxu0 %v2634_v16 }
 0x87b   :  { %2524 = vmatprep.subr.bf16.mxu0 %v2739_v15 }
 0x8fd   :  { %v908_v6 = vpop.xlane.xlu1 %907 }
 0x8fe   :  { %v912_v7 = vmul.f32 0.03125, %v908_v6 }
 0x900   :  { %v914_v8 = vsub.f32 %v904_v63, %v912_v7 }
 0x901   :  { %v911_v9 = vpop.xlane.xlu0 %910 }
 0x902   :  { %v913_v10 = vmul.f32 0.03125, %v911_v9  ;;  %v916_v11 = vmul.f32 %v914_v8, %v914_v8 }
 0x904   :  { %v915_v12 = vsub.f32 %v905_v4, %v913_v10  ;;  %v918_v31 = vsel %vm28_vm0, %v916_v11, 0.0 }
 0x905   :  { %919 = vadd.xlane.f32.xlu0 %v918_v31 }
 0x906   :  { %v917_v13 = vmul.f32 %v915_v12, %v915_v12 }
 0x908   :  { %v921_v14 = vsel %vm28_vm0, %v917_v13, 0.0 }
 0x909   :  { %922 = vadd.xlane.f32.xlu0 %v921_v14 }
 0x98e   :  { %v920_v17 = vpop.xlane.xlu0 %919 }
 0x98f   :  { %v924_v18 = vmul.f32 0.03125, %v920_v17 }
 0x991   :  { %v926_v19 = vadd.f32 1e-12, %v924_v18 }
 0x992   :  { %v923_v20 = vpop.xlane.xlu0 %922 }
 0x993   :  { %2677 = vrsqrt.f32 %v926_v19  ;;  %v925_v21 = vmul.f32 0.03125, %v923_v20 }
 0x995   :  { %v927_v22 = vadd.f32 1e-12, %v925_v21 }
 0x997   :  { %2679 = vrsqrt.f32 %v927_v22 }
 0x9a0   :  { %v2678_v23 = vpop.eup %2677 }
 0x9a1   :  { %v930_v24 = vmul.f32 %v2678_v23, %v914_v8  ;;  %v2296_v8 = vld [vmem:[%s3202_s2 + $0x7] ss:$0 sm:$0xff] }
 0x9a3   :  { %v936_v28 = vmul.f32 %v2286_v25, %v930_v24 }
 0x9a4   :  { %v2680_v26 = vpop.eup %2679 }
 0x9a5   :  { %v931_v27 = vmul.f32 %v2680_v26, %v915_v12  ;;  %v2949_v33 = vadd.f32 %v2287_v29, %v936_v28  ;;  %v2643_v28 = vld [vmem:[%s3203_s3 + $0x28] sm:$0xff]  }
 0x9a7   :  { %v937_v30 = vmul.f32 %v2286_v25, %v931_v27 }
 0x9a9   :  { %v2951_v34 = vadd.f32 %v2287_v29, %v937_v30  ;;  %v2644_v29 = vld [vmem:[%s3203_s3 + $0x20] sm:$0xff]  }
 0x9ab   :  { %v944_v35 = vpack.c.bf16 %v2951_v34, %v2949_v33 }
 0x9ad   :  { %2501 = vmatmul.mubr.msk.bf16.vlgmr.msra.gmra.mxu0 %vm28_vm0, %v944_v35 }
 0x9ae   :  { %2528 = vmatprep.mubr.msk.bf16.mxu0 %vm2740_vm1, %v2739_v15  ;;  %2525 = vmatpush3.bf16.msra.mxu0 %v2643_v28 }
 0x9af   :  { %2526 = vmatprep.subr.bf16.mxu0 %v2739_v15 }
 0x9b2   :  { %2527 = vmatpush3.bf16.msra.mxu0 %v2644_v29 }
 0x9b3   :  { %2532 = vmatprep.subr.mxu0 %v2739_v15 }
 0xa6d   :  { %v1003_v46 = vpop.f32.mrf.mxu0 }
 0xa6e   :  { %v1004_v48 = vadd.f32 %v2292_v36, %v1003_v46 }
 0xa6f   :  { %v2502_v49 = vpop.f32.mrf.mxu0 }
 0xa70   :  { %v1012_v50 = vmul.f32 0.044715, %v1004_v48  ;;  %v1010_v2 = vmul.f32 0.5, %v1004_v48 }
 0xa71   :  { %v1006_v51 = vpop.f32.mrf.mxu0 }
 0xa72   :  { %v1014_v52 = vmul.f32 %v1012_v50, %v1004_v48  ;;  %v1007_v53 = vadd.f32 %v2292_v36, %v1006_v51  ;;  %v2306_v36 = vld [vmem:[%s3202_s2 + $0x9] ss:$0 sm:$0xff]  ;;  %v2331_v51 = vld [vmem:[%s3202_s2 + $0xa] ss:$0 sm:$0xff] }
 0xa73   :  { %v2503_v54 = vpop.f32.mrf.mxu0 }
 0xa74   :  { %v1016_v55 = vmul.f32 %v1014_v52, %v1004_v48  ;;  %v1013_v56 = vmul.f32 0.044715, %v1007_v53  ;;  %v1011_v3 = vmul.f32 0.5, %v1007_v53 }
 0xa76   :  { %v1018_v57 = vadd.f32 %v1016_v55, %v1004_v48  ;;  %v1015_v58 = vmul.f32 %v1013_v56, %v1007_v53 }
 0xa78   :  { %v1020_v59 = vmul.f32 0.7978846, %v1018_v57  ;;  %v1017_v60 = vmul.f32 %v1015_v58, %v1007_v53 }
 0xa7a   :  { %2681 = vtanh.f32 %v1020_v59  ;;  %v1019_v61 = vadd.f32 %v1017_v60, %v1007_v53 }
 0xa7c   :  { %v1021_v62 = vmul.f32 0.7978846, %v1019_v61 }
 0xa7e   :  { %2683 = vtanh.f32 %v1021_v62 }
 0xa87   :  { %v2682_v63 = vpop.eup %2681 }
 0xa88   :  { %v1024_v0 = vadd.f32 1.0, %v2682_v63 }
 0xa8a   :  { %v1026_v5 = vmul.f32 %v1024_v0, %v1010_v2 }
 0xa8b   :  { %v2684_v1 = vpop.eup %2683 }
 0xa8c   :  { %v1025_v4 = vadd.f32 1.0, %v2684_v1 }
 0xa8e   :  { %v1027_v6 = vmul.f32 %v1025_v4, %v1011_v3 }
 0xa90   :  { %v1028_v7 = vpack.c.bf16 %v1027_v6, %v1026_v5 }
 0xa92   :  { %2521 = vmatmul.mubr.bf16.vlgmr.msra.gmra.mxu1 %v1028_v7 }
 0xa93   :  { %2576 = vmatprep.mubr.msk.bf16.mxu1 %vm2740_vm1, %v2739_v15 }
 0xb52   :  { %v1115_v9 = vpop.f32.mrf.mxu1 }
 0xb53   :  { %v1116_v10 = vadd.f32 %v2296_v8, %v1115_v9 }
 0xb54   :  { %v2522_v11 = vpop.f32.mrf.mxu1 }
 0xb55   :  { %v1122_v12 = vadd.f32 %v1116_v10, %v2949_v33 }
 0xb56   :  { %v1118_v31 = vpop.f32.mrf.mxu1 }
 0xb57   :  { %v1119_v13 = vadd.f32 %v2296_v8, %v1118_v31  ;;  %v1124_v14 = vsel %vm28_vm0, %v1122_v12, 0.0 }
 0xb58   :  { %1125 = vadd.xlane.f32.xlu1 %v1124_v14  ;;  %v2523_v32 = vpop.f32.mrf.mxu1 }
 0xb59   :  { %v1123_v16 = vadd.f32 %v1119_v13, %v2951_v34 }
 0xb5b   :  { %v1127_v17 = vsel %vm28_vm0, %v1123_v16, 0.0 }
 0xb5c   :  { %1128 = vadd.xlane.f32.xlu0 %v1127_v17 }
 0xbe1   :  { %v1126_v18 = vpop.xlane.xlu1 %1125 }
 0xbe2   :  { %v1130_v19 = vmul.f32 0.03125, %v1126_v18 }
 0xbe4   :  { %v1132_v20 = vsub.f32 %v1122_v12, %v1130_v19 }
 0xbe5   :  { %v1129_v21 = vpop.xlane.xlu0 %1128 }
 0xbe6   :  { %v1131_v22 = vmul.f32 0.03125, %v1129_v21  ;;  %v1134_v23 = vmul.f32 %v1132_v20, %v1132_v20 }
 0xbe8   :  { %v1133_v24 = vsub.f32 %v1123_v16, %v1131_v22  ;;  %v1136_v25 = vsel %vm28_vm0, %v1134_v23, 0.0 }
 0xbe9   :  { %1137 = vadd.xlane.f32.xlu1 %v1136_v25 }
 0xbea   :  { %v1135_v26 = vmul.f32 %v1133_v24, %v1133_v24 }
 0xbec   :  { %v1139_v27 = vsel %vm28_vm0, %v1135_v26, 0.0 }
 0xbed   :  { %1140 = vadd.xlane.f32.xlu0 %v1139_v27 }
 0xc72   :  { %v1138_v30 = vpop.xlane.xlu1 %1137 }
 0xc73   :  { %v1142_v33 = vmul.f32 0.03125, %v1138_v30 }
 0xc75   :  { %v1144_v34 = vadd.f32 1e-12, %v1142_v33 }
 0xc76   :  { %v1141_v35 = vpop.xlane.xlu0 %1140 }
 0xc77   :  { %2685 = vrsqrt.f32 %v1144_v34  ;;  %v1143_v37 = vmul.f32 0.03125, %v1141_v35 }
 0xc79   :  { %v1145_v38 = vadd.f32 1e-12, %v1143_v37 }
 0xc7b   :  { %2687 = vrsqrt.f32 %v1145_v38 }
 0xc84   :  { %v2686_v39 = vpop.eup %2685 }
 0xc85   :  { %v1148_v40 = vmul.f32 %v2686_v39, %v1132_v20 }
 0xc87   :  { %v1154_v45 = vmul.f32 %v2305_v41, %v1148_v40 }
 0xc88   :  { %v2688_v42 = vpop.eup %2687 }
 0xc89   :  { %v1149_v44 = vmul.f32 %v2688_v42, %v1133_v24  ;;  %v3018_v48 = vadd.f32 %v2306_v36, %v1154_v45 }
 0xc8b   :  { %v1155_v46 = vmul.f32 %v2305_v41, %v1149_v44 }
 0xc8d   :  { %v3020_v49 = vadd.f32 %v2306_v36, %v1155_v46 }
 0xc8f   :  { %v1191_v50 = vpack.c.bf16 %v3020_v49, %v3018_v48 }
 0xc91   :  { %2529 = vmatmul.mubr.msk.bf16.vlgmr.msra.gmra.mxu0 %vm28_vm0, %v1191_v50 }
 0xc92   :  { %2534 = vmatprep.mubr.msk.f32.mxu0 %vm2740_vm1, %v2739_v15 }
 0xd51   :  { %v1250_v52 = vpop.f32.mrf.mxu0 }
 0xd52   :  { %v3030_v53 = vadd.f32 %v2331_v51, %v1250_v52 }
 0xd53   :  { %v2530_v54 = vpop.f32.mrf.mxu0 }
 0xd54   :  { %1258 = vrot.lane.b32.xlu1 %v3030_v53, %s2741_s6 }
 0xd55   :  { %v1253_v55 = vpop.f32.mrf.mxu0 }
 0xd56   :  { %v3034_v56 = vadd.f32 %v2331_v51, %v1253_v55 }
 0xd57   :  { %v2531_v57 = vpop.f32.mrf.mxu0 }
 0xd58   :  { %1335 = vrot.lane.b32.xlu0 %v3034_v56, %s2741_s6 }
 0xdc6   :  { %v1259_v58 = vpop.permute.xlu1 %1258 }
 0xdc7   :  { %2533 = vmatpush3.xpose.msk.msra.mxu0 %vm176_vm2, %v1259_v58 }
 0xdc8   :  { %2537 = vmatprep.subr.mxu0 %v2739_v15 }
 0xdca   :  { %2535 = vmatmul.mubr.msk.f32.vlgmr.msra.gmra.mxu0 %vm176_vm2, %v3030_v53  ;;  %v1336_v59 = vpop.permute.xlu0 %1335 }
 0xdcb   :  { %2538 = vmatpush3.xpose.msk.msra.mxu0 %vm176_vm2, %v1336_v59  ;;  %2539 = vmatprep.mubr.msk.f32.mxu0 %vm2740_vm1, %v2739_v15 }
 0xdcc   :  { %2542 = vmatprep.subr.mxu0 %v2739_v15 }
 0xdce   :  { %2540 = vmatmul.mubr.msk.f32.vlgmr.msra.gmra.mxu0 %vm176_vm2, %v3034_v56 }
 0xdcf   :  { %2544 = vmatprep.mubr.msk.f32.mxu0 %vm2740_vm1, %v2739_v15 }
 0xe8a   :  { %v1330_v60 = vpop.f32.mrf.mxu0 }
 0xe8b   :  { %v1331_v61 = vadd.f32 %v2845_v43, %v1330_v60  ;;  %v2646_v60 = vld [vmem:[%s3204_s4 + $0x50] sm:$0xff]  }
 0xe8c   :  { %v2536_v62 = vpop.f32.mrf.mxu0 }
 0xe8d   :  { %v1411_v63 = vsel %vm328_vm3, %v1331_v61, -inf }
 0xe8e   :  { %1412 = vmax.xlane.f32.xlu1 %v1411_v63  ;;  %v1407_v0 = vpop.f32.mrf.mxu0 }
 0xe8f   :  { %v1408_v1 = vadd.f32 %v2851_v47, %v1407_v0 }
 0xe90   :  { %v2541_v2 = vpop.f32.mrf.mxu0 }
 0xe91   :  { %v1414_v3 = vsel %vm328_vm3, %v1408_v1, -inf }
 0xe92   :  { %1415 = vmax.xlane.f32.xlu0 %v1414_v3 }
 0xe9f   :  { %1433 = vrot.lane.b32.xlu1 %v3030_v53, %s2742_s11 }
 0xf17   :  { %v1413_v4 = vpop.xlane.xlu1 %1412 }
 0xf18   :  { %v1417_v5 = vsub.f32 %v1331_v61, %v1413_v4 }
 0xf1a   :  { %v1419_v6 = vmul.f32 1.442695, %v1417_v5 }
 0xf1b   :  { %v1434_v7 = vpop.permute.xlu1 %1433  ;;  %v1416_v8 = vpop.xlane.xlu0 %1415 }
 0xf1c   :  { %2689 = vpow2.f32 %v1419_v6  ;;  %v1418_v9 = vsub.f32 %v1408_v1, %v1416_v8  ;;  %2543 = vmatpush3.msra.mxu0 %v1434_v7  ;;  %v2347_v8 = vld [vmem:[%s3202_s2 + $0xb] ss:$0 sm:$0xff] }
 0xf1d   :  { %2547 = vmatprep.subr.mxu0 %v2739_v15 }
 0xf1e   :  { %v1421_v10 = vmul.f32 1.442695, %v1418_v9 }
 0xf20   :  { %2691 = vpow2.f32 %v1421_v10 }
 0xf29   :  { %v2690_v11 = vpop.eup %2689 }
 0xf2a   :  { %v1423_v12 = vsel %vm328_vm3, %v2690_v11, 0.0 }
 0xf2b   :  { %1424 = vadd.xlane.f32.xlu1 %v1423_v12 }
 0xf2d   :  { %v2692_v31 = vpop.eup %2691 }
 0xf2e   :  { %v1426_v13 = vsel %vm328_vm3, %v2692_v31, 0.0 }
 0xf2f   :  { %1427 = vadd.xlane.f32.xlu0 %v1426_v13 }
 0xf3c   :  { %1587 = vrot.lane.b32.xlu1 %v3030_v53, %s2743_s12 }
 0xf40   :  { %1585 = vrot.lane.b32.xlu1 %v3030_v53, %s2744_s1 }
 0xf44   :  { %1665 = vrot.lane.b32.xlu1 %v3034_v56, %s2743_s12 }
 0xf45   :  { %1509 = vrot.lane.b32.xlu0 %v3034_v56, %s2742_s11 }
 0xf49   :  { %1663 = vrot.lane.b32.xlu0 %v3034_v56, %s2744_s1 }
 0xfb4   :  { %v1425_v14 = vpop.xlane.xlu1 %1424 }
 0xfb5   :  { %2693 = vrcp.f32 %v1425_v14 }
 0xfb8   :  { %v1428_v32 = vpop.xlane.xlu0 %1427  ;;  %v1588_v16 = vpop.permute.xlu1 %1587 }
 0xfb9   :  { %2695 = vrcp.f32 %v1428_v32 }
 0xfbc   :  { %v1510_v19 = vpop.permute.xlu0 %1509  ;;  %v1586_v21 = vpop.permute.xlu1 %1585 }
 0xfc0   :  { %v1666_v23 = vpop.permute.xlu1 %1665  ;;  %v1664_v24 = vpop.permute.xlu0 %1663 }
 0xfc2   :  { %v2694_v17 = vpop.eup %2693 }
 0xfc3   :  { %v1430_v18 = vmul.f32 %v2694_v17, %v2690_v11 }
 0xfc5   :  { %2545 = vmatmul.mubr.msk.f32.vlgmr.msra.gmra.mxu0 %vm328_vm3, %v1430_v18 }
 0xfc6   :  { %v2696_v20 = vpop.eup %2695  ;;  %2548 = vmatpush3.msra.mxu0 %v1510_v19  ;;  %2549 = vmatprep.mubr.msk.f32.mxu0 %vm2740_vm1, %v2739_v15 }
 0xfc7   :  { %2552 = vmatprep.subr.mxu0 %v2739_v15  ;;  %v1432_v22 = vmul.f32 %v2696_v20, %v2692_v31 }
 0xfc9   :  { %2550 = vmatmul.mubr.msk.f32.vlgmr.msra.gmra.mxu0 %vm328_vm3, %v1432_v22 }
 0xfca   :  { %2553 = vmatpush3.xpose.msk.msra.mxu0 %vm176_vm2, %v1588_v16  ;;  %2554 = vmatprep.mubr.msk.f32.mxu0 %vm2740_vm1, %v2739_v15 }
 0xfcb   :  { %2557 = vmatprep.subr.mxu0 %v2739_v15 }
 0xfcd   :  { %2555 = vmatmul.mubr.msk.f32.vlgmr.msra.gmra.mxu0 %vm176_vm2, %v1586_v21 }
 0xfce   :  { %2558 = vmatpush3.xpose.msk.msra.mxu0 %vm176_vm2, %v1666_v23  ;;  %2559 = vmatprep.mubr.msk.f32.mxu0 %vm2740_vm1, %v2739_v15 }
 0xfcf   :  { %2562 = vmatprep.subr.mxu0 %v2739_v15 }
 0xfd1   :  { %2560 = vmatmul.mubr.msk.f32.vlgmr.msra.gmra.mxu0 %vm176_vm2, %v1664_v24 }
 0xfd2   :  { %2564 = vmatprep.mubr.msk.f32.mxu0 %vm2740_vm1, %v2739_v15 }
0x1085   :  { %v3086_v25 = vpop.f32.mrf.mxu0 }
0x1087   :  { %v2546_v26 = vpop.f32.mrf.mxu0 }
0x1089   :  { %v1581_v27 = vpop.f32.mrf.mxu0 }
0x108b   :  { %v2551_v28 = vpop.f32.mrf.mxu0 }
0x108d   :  { %v1659_v29 = vpop.f32.mrf.mxu0 }
0x108e   :  { %v1660_v30 = vadd.f32 %v2845_v43, %v1659_v29 }
0x108f   :  { %v2556_v33 = vpop.f32.mrf.mxu0 }
0x1090   :  { %v1741_v34 = vsel %vm328_vm3, %v1660_v30, -inf }
0x1091   :  { %1742 = vmax.xlane.f32.xlu1 %v1741_v34  ;;  %v1737_v35 = vpop.f32.mrf.mxu0 }
0x1092   :  { %v1738_v37 = vadd.f32 %v2851_v47, %v1737_v35 }
0x1093   :  { %v2561_v38 = vpop.f32.mrf.mxu0 }
0x1094   :  { %v1744_v39 = vsel %vm328_vm3, %v1738_v37, -inf }
0x1095   :  { %1745 = vmax.xlane.f32.xlu0 %v1744_v39  ;;  %v2351_v39 = vld [vmem:[%s3202_s2 + $0xc] ss:$0 sm:$0xff] }
0x10a2   :  { %1763 = vrot.lane.b32.xlu1 %v3030_v53, %s2745_s13 }
0x111a   :  { %v1743_v40 = vpop.xlane.xlu1 %1742 }
0x111b   :  { %v1747_v41 = vsub.f32 %v1660_v30, %v1743_v40 }
0x111d   :  { %v1749_v42 = vmul.f32 1.442695, %v1747_v41 }
0x111e   :  { %v1764_v44 = vpop.permute.xlu1 %1763  ;;  %v1746_v45 = vpop.xlane.xlu0 %1745 }
0x111f   :  { %2697 = vpow2.f32 %v1749_v42  ;;  %v1748_v43 = vsub.f32 %v1738_v37, %v1746_v45  ;;  %2563 = vmatpush3.msra.mxu0 %v1764_v44  ;;  %v2352_v44 = vld [vmem:[%s3202_s2 + $0xd] ss:$0 sm:$0xff] }
0x1120   :  { %2567 = vmatprep.subr.mxu0 %v2739_v15 }
0x1121   :  { %v1751_v36 = vmul.f32 1.442695, %v1748_v43 }
0x1123   :  { %2699 = vpow2.f32 %v1751_v36 }
0x112c   :  { %v2698_v47 = vpop.eup %2697 }
0x112d   :  { %v1753_v46 = vsel %vm328_vm3, %v2698_v47, 0.0 }
0x112e   :  { %1754 = vadd.xlane.f32.xlu0 %v1753_v46  ;;  %v2649_v46 = vld [vmem:[%s3204_s4 + $0x98] sm:$0xff]  }
0x1130   :  { %v2700_v50 = vpop.eup %2699 }
0x1131   :  { %v1756_v51 = vsel %vm328_vm3, %v2700_v50, 0.0 }
0x1132   :  { %1757 = vadd.xlane.f32.xlu0 %v1756_v51  ;;  %v2651_v51 = vld [vmem:[%s3204_s4 + $0x88] sm:$0xff]  }
0x1148   :  { %1839 = vrot.lane.b32.xlu0 %v3034_v56, %s2745_s13  ;;  %v2645_v56 = vld [vmem:[%s3204_s4 + $0x58] sm:$0xff]  }
0x1149   :  { %2573 = vmatpush3.bf16.msra.mxu1 %v2645_v56 }
0x114a   :  { %2574 = vmatprep.subr.bf16.mxu1 %v2739_v15 }
0x114d   :  { %2575 = vmatpush3.bf16.msra.mxu1 %v2646_v60 }
0x114e   :  { %2588 = vmatprep.subr.bf16.mxu1 %v2739_v15 }
0x11b7   :  { %v1755_v52 = vpop.xlane.xlu0 %1754 }
0x11b8   :  { %2701 = vrcp.f32 %v1755_v52  ;;  %v2652_v52 = vld [vmem:[%s3204_s4 + $0x80] sm:$0xff]  }
0x11bb   :  { %v1758_v53 = vpop.xlane.xlu0 %1757 }
0x11bc   :  { %2703 = vrcp.f32 %v1758_v53  ;;  %v2653_v53 = vld [vmem:[%s3204_s4 + $0x78] sm:$0xff]  }
0x11bf   :  { %v1840_v57 = vpop.permute.xlu0 %1839 }
0x11c5   :  { %v2702_v54 = vpop.eup %2701 }
0x11c6   :  { %v1760_v55 = vmul.f32 %v2702_v54, %v2698_v47  ;;  %v2654_v54 = vld [vmem:[%s3204_s4 + $0x70] sm:$0xff]  }
0x11c8   :  { %2565 = vmatmul.mubr.msk.f32.vlgmr.msra.gmra.mxu0 %vm328_vm3, %v1760_v55  ;;  %v2655_v55 = vld [vmem:[%s3204_s4 + $0x68] sm:$0xff]  }
0x11c9   :  { %v2704_v58 = vpop.eup %2703  ;;  %2568 = vmatpush3.msra.mxu0 %v1840_v57  ;;  %2569 = vmatprep.mubr.msk.f32.mxu0 %vm2740_vm1, %v2739_v15  ;;  %v2656_v57 = vld [vmem:[%s3204_s4 + $0x60] sm:$0xff]  }
0x11ca   :  { %v1762_v59 = vmul.f32 %v2704_v58, %v2700_v50  ;;  %2580 = vmatprep.subr.bf16.mxu0 %v2739_v15  ;;  %v2650_v50 = vld [vmem:[%s3204_s4 + $0x90] sm:$0xff]   ;;  %v2357_v58 = vld [vmem:[%s3202_s2 + $0xe] ss:$0 sm:$0xff] }
0x11cc   :  { %2570 = vmatmul.mubr.msk.f32.vlgmr.msra.gmra.mxu0 %vm328_vm3, %v1762_v59 }
0x11cd   :  { %2584 = vmatprep.mubr.msk.bf16.mxu0 %vm2740_vm1, %v2739_v15 }
0x1288   :  { %v1835_v61 = vpop.f32.mrf.mxu0 }
0x128a   :  { %v2566_v62 = vpop.f32.mrf.mxu0 }
0x128c   :  { %v1911_v63 = vpop.f32.mrf.mxu0 }
0x128d   :  { %v2624_v0 = vpack.i.bf16 %v1911_v63, %v1835_v61 }
0x128e   :  { %v2571_v1 = vpop.f32.mrf.mxu0 }
0x128f   :  { %2625 = vrot.lane.b32.xlu1 %v2624_v0, %s2746_s18 }
0x1301   :  { %v2626_v2 = vpop.permute.xlu1 %2625 }
0x1302   :  { %v2628_v3 = vunpack.i.h.bf16 %v2626_v2  ;;  %v2627_v4 = vunpack.i.l.bf16 %v2626_v2 }
0x1304   :  { %v1924_v5 = vsel %vm176_vm2, %v1581_v27, %v2628_v3  ;;  %v1923_v6 = vsel %vm176_vm2, %v3086_v25, %v2627_v4  ;;  %v2648_v27 = vld [vmem:[%s3203_s3 + $0x30] sm:$0xff]  }
0x1305   :  { %v1925_v7 = vpack.c.bf16 %v1924_v5, %v1923_v6 }
0x1307   :  { %2577 = vmatmul.mubr.msk.bf16.vlgmr.msra.gmra.mxu1 %vm28_vm0, %v1925_v7 }
0x1308   :  { %2604 = vmatprep.mubr.msk.bf16.mxu1 %vm2740_vm1, %v2739_v15  ;;  %2589 = vmatpush3.bf16.msra.mxu1 %v2649_v46  ;;  %v2371_v46 = vld [vmem:[%s3202_s2 + $0x11] ss:$0 sm:$0xff] }
0x1309   :  { %2590 = vmatprep.subr.bf16.mxu1 %v2739_v15 }
0x130c   :  { %2591 = vmatpush3.bf16.msra.mxu1 %v2650_v50 }
0x130d   :  { %2592 = vmatprep.subr.bf16.mxu1 %v2739_v15 }
0x1310   :  { %2593 = vmatpush3.bf16.msra.mxu1 %v2651_v51 }
0x1311   :  { %2594 = vmatprep.subr.bf16.mxu1 %v2739_v15 }
0x1314   :  { %2595 = vmatpush3.bf16.msra.mxu1 %v2652_v52 }
0x1315   :  { %2596 = vmatprep.subr.bf16.mxu1 %v2739_v15 }
0x1318   :  { %2597 = vmatpush3.bf16.msra.mxu1 %v2653_v53 }
0x1319   :  { %2598 = vmatprep.subr.bf16.mxu1 %v2739_v15 }
0x131c   :  { %2599 = vmatpush3.bf16.msra.mxu1 %v2654_v54 }
0x131d   :  { %2600 = vmatprep.subr.bf16.mxu1 %v2739_v15 }
0x1320   :  { %2601 = vmatpush3.bf16.msra.mxu1 %v2655_v55 }
0x1321   :  { %2602 = vmatprep.subr.bf16.mxu1 %v2739_v15 }
0x1324   :  { %2603 = vmatpush3.bf16.msra.mxu1 %v2656_v57 }
0x13c7   :  { %v1979_v9 = vpop.f32.mrf.mxu1 }
0x13c8   :  { %v1980_v10 = vadd.f32 %v2347_v8, %v1979_v9 }
0x13c9   :  { %v2578_v11 = vpop.f32.mrf.mxu1 }
0x13ca   :  { %v1986_v12 = vadd.f32 %v1980_v10, %v3018_v48 }
0x13cb   :  { %v1982_v31 = vpop.f32.mrf.mxu1 }
0x13cc   :  { %v1983_v13 = vadd.f32 %v2347_v8, %v1982_v31  ;;  %v1988_v14 = vsel %vm28_vm0, %v1986_v12, 0.0 }
0x13cd   :  { %1989 = vadd.xlane.f32.xlu1 %v1988_v14  ;;  %v2579_v32 = vpop.f32.mrf.mxu1 }
0x13ce   :  { %v1987_v16 = vadd.f32 %v1983_v13, %v3020_v49  ;;  %v2647_v49 = vld [vmem:[%s3203_s3 + $0x38] sm:$0xff]  }
0x13cf   :  { %2581 = vmatpush3.bf16.msra.mxu0 %v2647_v49 }
0x13d0   :  { %v1991_v17 = vsel %vm28_vm0, %v1987_v16, 0.0  ;;  %2582 = vmatprep.subr.bf16.mxu0 %v2739_v15 }
0x13d1   :  { %1992 = vadd.xlane.f32.xlu0 %v1991_v17  ;;  %v2361_v17 = vld [vmem:[%s3202_s2 + $0xf] ss:$0 sm:$0xff] }
0x13d3   :  { %2583 = vmatpush3.bf16.msra.mxu0 %v2648_v27 }
0x1456   :  { %v1990_v18 = vpop.xlane.xlu1 %1989 }
0x1457   :  { %v1994_v19 = vmul.f32 0.03125, %v1990_v18 }
0x1459   :  { %v1996_v20 = vsub.f32 %v1986_v12, %v1994_v19 }
0x145a   :  { %v1993_v21 = vpop.xlane.xlu0 %1992 }
0x145b   :  { %v1995_v22 = vmul.f32 0.03125, %v1993_v21  ;;  %v1998_v23 = vmul.f32 %v1996_v20, %v1996_v20 }
0x145d   :  { %v1997_v24 = vsub.f32 %v1987_v16, %v1995_v22  ;;  %v2000_v48 = vsel %vm28_vm0, %v1998_v23, 0.0 }
0x145e   :  { %2001 = vadd.xlane.f32.xlu0 %v2000_v48 }
0x145f   :  { %v1999_v25 = vmul.f32 %v1997_v24, %v1997_v24 }
0x1461   :  { %v2003_v26 = vsel %vm28_vm0, %v1999_v25, 0.0 }
0x1462   :  { %2004 = vadd.xlane.f32.xlu1 %v2003_v26 }
0x14e7   :  { %v2002_v28 = vpop.xlane.xlu0 %2001 }
0x14e8   :  { %v2006_v29 = vmul.f32 0.03125, %v2002_v28 }
0x14ea   :  { %v2008_v30 = vadd.f32 1e-12, %v2006_v29 }
0x14eb   :  { %v2005_v33 = vpop.xlane.xlu1 %2004 }
0x14ec   :  { %2705 = vrsqrt.f32 %v2008_v30  ;;  %v2007_v34 = vmul.f32 0.03125, %v2005_v33 }
0x14ee   :  { %v2009_v35 = vadd.f32 1e-12, %v2007_v34 }
0x14f0   :  { %2707 = vrsqrt.f32 %v2009_v35 }
0x14f9   :  { %v2706_v37 = vpop.eup %2705 }
0x14fa   :  { %v2012_v38 = vmul.f32 %v2706_v37, %v1996_v20 }
0x14fc   :  { %v2018_v42 = vmul.f32 %v2351_v39, %v2012_v38 }
0x14fd   :  { %v2708_v40 = vpop.eup %2707 }
0x14fe   :  { %v2013_v41 = vmul.f32 %v2708_v40, %v1997_v24  ;;  %v2024_v43 = vadd.f32 %v2352_v44, %v2018_v42 }
0x1500   :  { %v2019_v45 = vmul.f32 %v2351_v39, %v2013_v41 }
0x1502   :  { %v3143_v36 = vadd.f32 %v2352_v44, %v2019_v45 }
0x1504   :  { %v2026_v47 = vpack.c.bf16 %v3143_v36, %v2024_v43 }
0x1506   :  { %2585 = vmatmul.mubr.msk.bf16.vlgmr.msra.gmra.mxu0 %vm28_vm0, %v2026_v47 }
0x15c6   :  { %v2085_v59 = vpop.f32.mrf.mxu0 }
0x15c7   :  { %v2086_v56 = vadd.f32 %v2357_v58, %v2085_v59 }
0x15c8   :  { %v2586_v60 = vpop.f32.mrf.mxu0 }
0x15c9   :  { %v2094_v61 = vmul.f32 0.044715, %v2086_v56  ;;  %v2092_v12 = vmul.f32 0.5, %v2086_v56 }
0x15ca   :  { %v2088_v62 = vpop.f32.mrf.mxu0 }
0x15cb   :  { %v2096_v63 = vmul.f32 %v2094_v61, %v2086_v56  ;;  %v2089_v0 = vadd.f32 %v2357_v58, %v2088_v62 }
0x15cc   :  { %v2587_v1 = vpop.f32.mrf.mxu0 }
0x15cd   :  { %v2098_v2 = vmul.f32 %v2096_v63, %v2086_v56  ;;  %v2095_v3 = vmul.f32 0.044715, %v2089_v0  ;;  %v2093_v31 = vmul.f32 0.5, %v2089_v0 }
0x15cf   :  { %v2100_v4 = vadd.f32 %v2098_v2, %v2086_v56  ;;  %v2097_v5 = vmul.f32 %v2095_v3, %v2089_v0 }
0x15d1   :  { %v2102_v6 = vmul.f32 0.7978846, %v2100_v4  ;;  %v2099_v7 = vmul.f32 %v2097_v5, %v2089_v0 }
0x15d3   :  { %2709 = vtanh.f32 %v2102_v6  ;;  %v2101_v15 = vadd.f32 %v2099_v7, %v2089_v0 }
0x15d5   :  { %v2103_v8 = vmul.f32 0.7978846, %v2101_v15 }
0x15d7   :  { %2711 = vtanh.f32 %v2103_v8 }
0x15e0   :  { %v2710_v9 = vpop.eup %2709 }
0x15e1   :  { %v2106_v10 = vadd.f32 1.0, %v2710_v9 }
0x15e3   :  { %v2108_v14 = vmul.f32 %v2106_v10, %v2092_v12 }
0x15e4   :  { %v2712_v11 = vpop.eup %2711 }
0x15e5   :  { %v2107_v13 = vadd.f32 1.0, %v2712_v11 }
0x15e7   :  { %v2109_v32 = vmul.f32 %v2107_v13, %v2093_v31 }
0x15e9   :  { %v2110_v16 = vpack.c.bf16 %v2109_v32, %v2108_v14 }
0x15eb   :  { %2605 = vmatmul.mubr.bf16.vlgmr.msra.gmra.mxu1 %v2110_v16 }
0x16ab   :  { %v2197_v18 = vpop.f32.mrf.mxu1 }
0x16ac   :  { %v2198_v19 = vadd.f32 %v2361_v17, %v2197_v18 }
0x16ad   :  { %v2606_v20 = vpop.f32.mrf.mxu1 }
0x16ae   :  { %v2204_v21 = vadd.f32 %v2198_v19, %v2024_v43 }
0x16af   :  { %v2200_v22 = vpop.f32.mrf.mxu1 }
0x16b0   :  { %v2201_v23 = vadd.f32 %v2361_v17, %v2200_v22  ;;  %v2206_v24 = vsel %vm28_vm0, %v2204_v21, 0.0 }
0x16b1   :  { %2207 = vadd.xlane.f32.xlu0 %v2206_v24  ;;  %v2607_v48 = vpop.f32.mrf.mxu1 }
0x16b2   :  { %v2205_v25 = vadd.f32 %v2201_v23, %v3143_v36  ;;  %v2370_v36 = vld [vmem:[%s3202_s2 + $0x10] ss:$0 sm:$0xff] }
0x16b4   :  { %v2209_v26 = vsel %vm28_vm0, %v2205_v25, 0.0 }
0x16b5   :  { %2210 = vadd.xlane.f32.xlu1 %v2209_v26 }
0x173a   :  { %v2208_v49 = vpop.xlane.xlu0 %2207 }
0x173b   :  { %v2212_v27 = vmul.f32 0.03125, %v2208_v49 }
0x173d   :  { %v2214_v28 = vsub.f32 %v2204_v21, %v2212_v27 }
0x173e   :  { %v2211_v29 = vpop.xlane.xlu1 %2210 }
0x173f   :  { %v2213_v30 = vmul.f32 0.03125, %v2211_v29  ;;  %v2216_v33 = vmul.f32 %v2214_v28, %v2214_v28 }
0x1741   :  { %v2215_v34 = vsub.f32 %v2205_v25, %v2213_v30  ;;  %v2218_v35 = vsel %vm28_vm0, %v2216_v33, 0.0 }
0x1742   :  { %2219 = vadd.xlane.f32.xlu0 %v2218_v35 }
0x1743   :  { %v2217_v37 = vmul.f32 %v2215_v34, %v2215_v34 }
0x1745   :  { %v2221_v38 = vsel %vm28_vm0, %v2217_v37, 0.0 }
0x1746   :  { %2222 = vadd.xlane.f32.xlu1 %v2221_v38 }
0x17cb   :  { %v2220_v39 = vpop.xlane.xlu0 %2219 }
0x17cc   :  { %v2224_v40 = vmul.f32 0.03125, %v2220_v39 }
0x17ce   :  { %v2226_v41 = vadd.f32 1e-12, %v2224_v40 }
0x17cf   :  { %v2223_v42 = vpop.xlane.xlu1 %2222 }
0x17d0   :  { %2713 = vrsqrt.f32 %v2226_v41  ;;  %v2225_v44 = vmul.f32 0.03125, %v2223_v42 }
0x17d2   :  { %v2227_v45 = vadd.f32 1e-12, %v2225_v44 }
0x17d4   :  { %2715 = vrsqrt.f32 %v2227_v45 }
0x17dd   :  { %v2714_v43 = vpop.eup %2713 }
0x17de   :  { %v2230_v47 = vmul.f32 %v2714_v43, %v2214_v28 }
0x17e0   :  { %v2236_v50 = vmul.f32 %v2370_v36, %v2230_v47 }
0x17e1   :  { %v2716_v51 = vpop.eup %2715 }
0x17e2   :  { %v2231_v52 = vmul.f32 %v2716_v51, %v2215_v34  ;;  %v2242_v53 = vadd.f32 %v2371_v46, %v2236_v50 }
0x17e4   :  { %v2237_v54 = vmul.f32 %v2370_v36, %v2231_v52  ;;  %2244 = vst.msk [vmem:[#allocation2] sm:$0xff] %vm28_vm0, %v2242_v53 }
0x17e6   :  { %v2243_v55 = vadd.f32 %v2371_v46, %v2237_v54 }
0x17e8   :  { %2245 = vst.msk [vmem:[#allocation2 + $0x8] sm:$0xff] %vm28_vm0, %v2243_v55 }
0x17e9   :  { %2728 = shalt.err (!%p2725_p4)
}
0x17ea   :  { %s2748_s2 = smov 128   ;;  %s2749_s3 = smov 8  }
0x17eb   :  { %2257 = dma.vmem_to_hbm [thread:$0]  %s2252_s21, 256, %s3205_s5, [#allocation3], %s2748_s2, %s2748_s2, %s2749_s3  }
0x17ec   :  { %2737 = dma.done.wait [#allocation3], 256  }
0x17ed   :  { %2738 = vsyncadd [#allocation3], 4294967040 }
0x17ee   :  { %2261 = vsyncpa [#allocation3], 1 }

</bundles_post_ra>
